<compile_context>
chip_gen: v7x
topology: tpu7x:2x2x1
jax: 0.10.0
libtpu: 0.0.40
codegen_flags: <defaults>
</compile_context>

<pallas_src>
import functools
import math

import jax
import jax.numpy as jnp
from jax.scipy.special import logsumexp
from jax.experimental import pallas as pl
from jax.experimental.pallas import tpu as pltpu

CFG = dict(
    hidden=32, heads=2, layers=2, intermediate=64, vocab=100, max_pos=64,
    num_types=8, max_type_len=2, position_weight=0.7, bi_label_weight=2.0,
    attn_hidden=64,
)

_NEG = -1e30


# --------------------------- in-kernel helpers ------------------------------ #

def _layer_norm(x, g, b, eps=1e-12):
    mu = jnp.mean(x, axis=-1, keepdims=True)
    xc = x - mu
    var = jnp.mean(xc * xc, axis=-1, keepdims=True)
    return xc * jax.lax.rsqrt(var + eps) * g + b


def _gelu(y):
    # TODO(synk): torch/BERT default is exact erf-GELU; tanh approximation differs ~1e-3.
    c = 0.7978845608028654
    return 0.5 * y * (1.0 + jnp.tanh(c * (y + 0.044715 * y * y * y)))


def _bf16_dot(a, b):
    # bf16 MXU operands, f32 accumulation (elementwise math stays f32).
    return jnp.dot(a.astype(jnp.bfloat16), b.astype(jnp.bfloat16),
                   preferred_element_type=jnp.float32)


# ------------- fully fused per-example kernel (encoder + heads) ------------- #

def _fused_kernel(emb_ref, bias_ref, st_ref, en_ref, sm_ref,
                  eg_ref, eb_ref,
                  wqkv_ref, bqkv_ref, wo_ref, bo_ref, ln1g_ref, ln1b_ref,
                  wi_ref, bi_ref, wo2_ref, bo2_ref, ln2g_ref, ln2b_ref,
                  posw_ref, posb_ref, aw1_ref, ab1_ref, aw2t_ref, ab2_ref,
                  tw_ref, tb_ref,
                  emis_ref, focal_ref, *, layers, heads):
    # -------- embeddings LayerNorm -------- #
    x = _layer_norm(emb_ref[0], eg_ref[...], eb_ref[...])        # [S, H] f32
    bias = bias_ref[0]                                           # [1, S] key-mask bias
    S, H = x.shape
    dh = H // heads
    scale = 1.0 / math.sqrt(dh)

    # -------- transformer encoder (static L, static heads) -------- #
    for l in range(layers):
        # fused QKV projection: one [S,H] x [H,3H] matmul
        qkv = _bf16_dot(x, wqkv_ref[l]) + bqkv_ref[l]            # [S, 3H]
        attn_out = bo_ref[l]                                     # [1, H] -> broadcasts
        wo_l = wo_ref[l]                                         # [H, H]
        for h in range(heads):
            qh = qkv[:, h * dh:(h + 1) * dh]
            kh = qkv[:, H + h * dh:H + (h + 1) * dh]
            vh = qkv[:, 2 * H + h * dh:2 * H + (h + 1) * dh]
            s = jax.lax.dot_general(
                qh.astype(jnp.bfloat16), kh.astype(jnp.bfloat16),
                (((1,), (1,)), ((), ())),
                preferred_element_type=jnp.float32) * scale + bias       # [S, S]
            s = s - jnp.max(s, axis=-1, keepdims=True)
            p = jnp.exp(s)
            p = p * pl.reciprocal(jnp.sum(p, axis=-1, keepdims=True), approx=True)
            ctx_h = _bf16_dot(p, vh)                             # [S, dh]
            # fold the output projection per head (sublane-aligned weight slice):
            # avoids materializing/concatenating the per-head context.
            attn_out = attn_out + _bf16_dot(ctx_h, wo_l[h * dh:(h + 1) * dh, :])
        x = _layer_norm(x + attn_out, ln1g_ref[l], ln1b_ref[l])
        inter = _gelu(_bf16_dot(x, wi_ref[l]) + bi_ref[l])       # [S, I]
        ffn = _bf16_dot(inter, wo2_ref[l]) + bo2_ref[l]
        x = _layer_norm(x + ffn, ln2g_ref[l], ln2b_ref[l])

    # -------- position-classifier emissions (consumed by the CRF outside) ---- #
    emis_ref[0] = _bf16_dot(x, posw_ref[...]) + posb_ref[...]               # [S, 3]

    # -------- span attention scores, row layout [1, S] (never transposed) ---- #
    a = jnp.tanh(_bf16_dot(x, aw1_ref[...]) + ab1_ref[...])                 # [S, A]
    srow = jax.lax.dot_general(
        aw2t_ref[...].astype(jnp.bfloat16), a.astype(jnp.bfloat16),
        (((1,), (1,)), ((), ())),
        preferred_element_type=jnp.float32) + ab2_ref[...]                  # [1, S]

    # -------- type head: masked span-softmax pooling + classifier + focal ---- #
    starts = st_ref[0]                                   # [T, 1] int32
    ends = en_ref[0]                                     # [T, 1] int32
    T = starts.shape[0]
    pos = jax.lax.broadcasted_iota(jnp.int32, (T, S), 1)
    in_span = (pos >= starts) & (pos < ends)
    sc = jnp.where(in_span, jnp.broadcast_to(srow, (T, S)), _NEG)
    sc = sc - jnp.max(sc, axis=-1, keepdims=True)
    w = jnp.exp(sc)
    w = w * pl.reciprocal(jnp.sum(w, axis=-1, keepdims=True), approx=True)

    pooled = _bf16_dot(w, x)                                        # [T, H]
    logits = _bf16_dot(pooled, tw_ref[...]) + tb_ref[...]           # [T, NT]

    mx = jnp.max(logits, axis=-1, keepdims=True)
    ex = jnp.exp(logits - mx)
    lse = jnp.log(jnp.sum(ex, axis=-1, keepdims=True)) + mx
    logp = logits - lse
    probs = jnp.exp(logp)
    sm = sm_ref[0]                                                  # [T, NT]
    ce = -jnp.sum(sm * logp, axis=-1, keepdims=True)
    pt = jnp.sum(sm * probs, axis=-1, keepdims=True)
    omp = 1.0 - pt
    focal_ref[0] = ce * omp * omp                                   # gamma = 2


def fused_forward_pallas(p, emb, attn_bias, starts, ends, smooth):
    B, S, H = emb.shape
    T = starts.shape[1]
    NT = p["type_w"].shape[1]
    L = p["wqkv"].shape[0]
    nh = CFG["heads"]

    def full_spec(arr):
        nd = arr.ndim
        return pl.BlockSpec(arr.shape, lambda b, nd=nd: (0,) * nd)

    def per_b(d1, d2):
        return pl.BlockSpec((1, d1, d2), lambda b: (b, 0, 0))

    weight_args = (p["emb_ln_g"], p["emb_ln_b"],
                   p["wqkv"], p["bqkv"], p["wo"], p["bo"], p["ln1_g"], p["ln1_b"],
                   p["wi"], p["bi"], p["wo2"], p["bo2"], p["ln2_g"], p["ln2_b"],
                   p["pos_cls_w"], p["pos_cls_b"],
                   p["att_w1"], p["att_b1"], p["att_w2t"], p["att_b2"],
                   p["type_w"], p["type_b"])

    in_specs = ([per_b(S, H), per_b(1, S), per_b(T, 1), per_b(T, 1), per_b(T, NT)]
                + [full_spec(w) for w in weight_args])
    out_specs = [per_b(S, 3), per_b(T, 1)]
    out_shape = [jax.ShapeDtypeStruct((B, S, 3), jnp.float32),
                 jax.ShapeDtypeStruct((B, T, 1), jnp.float32)]

    emis, focal = pl.pallas_call(
        functools.partial(_fused_kernel, layers=L, heads=nh),
        out_shape=out_shape,
        grid=(B,),
        in_specs=in_specs,
        out_specs=out_specs,
        compiler_params=pltpu.CompilerParams(dimension_semantics=("parallel",)),
    )(emb, attn_bias, starts, ends, smooth, *weight_args)
    return emis, focal[..., 0]                                      # [B,S,3], [B,T]


# --------------------------- CRF (plain JAX glue) --------------------------- #
# 3-tag sequential recursion; tiny, kept outside Pallas (pure latency, negligible).
# TODO(synk): could be moved into a small Pallas fori_loop kernel if profiling shows
# the XLA scans dominating after encoder fusion.

def crf_log_likelihood(emissions, tags, mask, start_t, end_t, trans):
    em_t = jnp.transpose(emissions, (1, 0, 2))        # [S, B, T]
    tags_t = tags.T
    maskf_t = mask.T.astype(emissions.dtype)
    maskb_t = mask.T.astype(bool)

    score0 = start_t[tags_t[0]] + jnp.take_along_axis(
        em_t[0], tags_t[0][:, None], axis=1)[:, 0]
    alpha0 = start_t[None, :] + em_t[0]

    def step(carry, xs):
        score, prev, alpha = carry
        em_i, tag_i, m_i, mb_i = xs
        # gold-path numerator
        stp = trans[prev, tag_i] + jnp.take_along_axis(
            em_i, tag_i[:, None], axis=1)[:, 0]
        score = score + stp * m_i
        prev = jnp.where(mb_i, tag_i, prev)
        # forward algorithm (log partition)
        nxt = logsumexp(alpha[:, :, None] + trans[None] + em_i[:, None, :], axis=1)
        alpha = jnp.where(mb_i[:, None], nxt, alpha)
        return (score, prev, alpha), None

    (num, last_tags, alpha), _ = jax.lax.scan(
        step, (score0, tags_t[0], alpha0),
        (em_t[1:], tags_t[1:], maskf_t[1:], maskb_t[1:]))
    num = num + end_t[last_tags]
    log_z = logsumexp(alpha + end_t[None, :], axis=1)
    return num - log_z


def crf_decode(emissions, mask, start_t, end_t, trans):
    B, S, T = emissions.shape
    em_t = jnp.transpose(emissions, (1, 0, 2))
    maskb_t = mask.T.astype(bool)
    score = start_t[None, :] + em_t[0]

    def step(score, xs):
        em_i, m_i = xs
        b = score[:, :, None] + trans[None] + em_i[:, None, :]
        nxt = jnp.max(b, axis=1)
        bp = jnp.argmax(b, axis=1).astype(jnp.int32)
        identity = jnp.broadcast_to(jnp.arange(T, dtype=jnp.int32)[None, :], (B, T))
        nxt = jnp.where(m_i[:, None], nxt, score)
        bp = jnp.where(m_i[:, None], bp, identity)
        return nxt, bp

    score, history = jax.lax.scan(step, score, (em_t[1:], maskb_t[1:]))
    score = score + end_t[None, :]
    last = jnp.argmax(score, axis=1).astype(jnp.int32)

    def back_step(cur, bp):
        prev = jnp.take_along_axis(bp, cur[:, None], axis=1)[:, 0]
        return prev, prev

    _, prevs = jax.lax.scan(back_step, last, history, reverse=True)
    tags = jnp.concatenate([prevs, last[None, :]], axis=0)
    return tags.T                                     # [B, S]


# ------------------------------- model ------------------------------------- #

def init_params(key):
    H, I, V = CFG["hidden"], CFG["intermediate"], CFG["vocab"]
    A, NT, L = CFG["attn_hidden"], CFG["num_types"], CFG["layers"]
    keys = iter(jax.random.split(key, 32))

    def w(shape):
        return jax.random.normal(next(keys), shape, jnp.float32) * 0.02

    return {
        "word_emb": w((V, H)),
        "pos_emb": w((CFG["max_pos"], H)),
        "tok_emb": w((2, H)),
        "emb_ln_g": jnp.ones((1, H), jnp.float32),
        "emb_ln_b": jnp.zeros((1, H), jnp.float32),
        # encoder weights stacked over layers; QKV fused along the output dim
        "wqkv": w((L, H, 3 * H)), "bqkv": jnp.zeros((L, 1, 3 * H), jnp.float32),
        "wo": w((L, H, H)), "bo": jnp.zeros((L, 1, H), jnp.float32),
        "ln1_g": jnp.ones((L, 1, H), jnp.float32),
        "ln1_b": jnp.zeros((L, 1, H), jnp.float32),
        "wi": w((L, H, I)), "bi": jnp.zeros((L, 1, I), jnp.float32),
        "wo2": w((L, I, H)), "bo2": jnp.zeros((L, 1, H), jnp.float32),
        "ln2_g": jnp.ones((L, 1, H), jnp.float32),
        "ln2_b": jnp.zeros((L, 1, H), jnp.float32),
        "pos_cls_w": w((H, 3)), "pos_cls_b": jnp.zeros((1, 3), jnp.float32),
        "att_w1": w((H, A)), "att_b1": jnp.zeros((1, A), jnp.float32),
        "att_w2t": w((1, A)), "att_b2": jnp.zeros((1, 1), jnp.float32),
        "type_w": w((H, NT)), "type_b": jnp.zeros((1, NT), jnp.float32),
        "bi_label_weight": jnp.array(CFG["bi_label_weight"], jnp.float32),
        # CRF parameters exactly as set in the torch __init__
        "crf_start": jnp.array([0.0, 0.0, -10000.0], jnp.float32),
        "crf_end": jnp.array([0.0, -100.0, 0.0], jnp.float32),
        "crf_trans": jnp.array([[-5.0, 20.0, -10000.0],
                                [-50.0, 0.0, 50.0],
                                [0.0, -50.0, 30.0]], jnp.float32),
    }


def forward_train(params, input_ids, attention_mask, position_labels,
                  type_labels, target_positions):
    B, S = input_ids.shape
    NT = CFG["num_types"]
    maskf = attention_mask.astype(jnp.float32)

    # --- embeddings (gathers: plain JAX, no clean Pallas equivalent) -------- #
    pos_ids = jnp.arange(S)
    emb = (params["word_emb"][input_ids]
           + params["pos_emb"][pos_ids][None, :, :]
           + params["tok_emb"][0][None, None, :])
    attn_bias = ((1.0 - maskf) * -10000.0)[:, None, :]        # [B, 1, S]

    # --- type-head side inputs ---------------------------------------------- #
    starts = target_positions[..., 0].astype(jnp.int32)[:, :, None]   # [B, T, 1]
    ends = target_positions[..., 1].astype(jnp.int32)[:, :, None]
    label_smoothing = 0.1
    smooth = (jax.nn.one_hot(type_labels, NT, dtype=jnp.float32)
              * (1.0 - label_smoothing) + label_smoothing / NT)        # [B, T, NT]

    # --- single fused pallas_call: encoder + emissions + type head ---------- #
    position_emissions, focal = fused_forward_pallas(
        params, emb, attn_bias, starts, ends, smooth)
    # nn.Dropout(0.1) exists in the torch module but is never applied in forward.

    # --- position head (CRF, tiny plain-JAX scans) --------------------------- #
    position_preds = crf_decode(position_emissions, attention_mask,
                                params["crf_start"], params["crf_end"],
                                params["crf_trans"])
    weights = jnp.where(position_labels > 0,
                        1.0 + params["bi_label_weight"], 1.0)
    weighted_emissions = position_emissions * weights[:, :, None]
    llh = crf_log_likelihood(weighted_emissions, position_labels, attention_mask,
                             params["crf_start"], params["crf_end"],
                             params["crf_trans"])
    position_loss = jnp.mean(-llh)

    # --- type loss: torch stacks only valid (start,end) pairs -> masked mean - #
    valid = (target_positions.sum(axis=-1) > 0).astype(jnp.float32)    # [B, T]
    type_loss = jnp.sum(focal * valid) / jnp.sum(valid) * 10.0

    pw = CFG["position_weight"]
    joint_loss = pw * position_loss + (1.0 - pw) * type_loss
    return {
        "loss": joint_loss,
        "position_loss": position_loss,
        "type_loss": type_loss,
        "joint_loss": joint_loss,
        "position_weight": jnp.float32(pw),
        "type_weight": jnp.float32(1.0 - pw),
        "position_preds": position_preds,
    }


# --------------------------------- main ------------------------------------ #

if __name__ == "__main__":
    key = jax.random.PRNGKey(0)
    k_param, k_ids, k_types = jax.random.split(key, 3)

    B, S = 2, 16
    params = init_params(k_param)

    input_ids = jax.random.randint(k_ids, (B, S), 0, CFG["vocab"], dtype=jnp.int32)
    attention_mask = jnp.array([[1] * 16,
                                [1] * 12 + [0] * 4], dtype=jnp.int32)
    position_labels = jnp.array(
        [[0, 1, 2, 2, 0, 0, 1, 2, 0, 1, 0, 0, 0, 1, 2, 0],
         [0, 1, 2, 0, 0, 1, 2, 2, 0, 0, 0, 0, 0, 0, 0, 0]], dtype=jnp.int32)
    type_labels = jax.random.randint(k_types, (B, CFG["max_type_len"]),
                                     0, CFG["num_types"], dtype=jnp.int32)
    # last pair is (0, 0) -> invalid, mirrors the torch "sum() > 0" skip
    target_positions = jnp.array([[[2, 6], [8, 10]],
                                  [[1, 4], [0, 0]]], dtype=jnp.int32)

    run = jax.jit(forward_train)
    out = run(params, input_ids, attention_mask, position_labels,
              type_labels, target_positions)
    jax.block_until_ready(out)
    print("KERNEL_OK")
</pallas_src>

<mosaic_0001>
module attributes {stable_mosaic.version = 11 : i64} {
  func.func @_fused_kernel(%arg0: i32, %arg1: memref<1x16x32xf32, #tpu.memory_space<vmem>>, %arg2: memref<1x1x16xf32, #tpu.memory_space<vmem>>, %arg3: memref<1x2x1xi32, #tpu.memory_space<vmem>>, %arg4: memref<1x2x1xi32, #tpu.memory_space<vmem>>, %arg5: memref<1x2x8xf32, #tpu.memory_space<vmem>>, %arg6: memref<1x32xf32, #tpu.memory_space<vmem>>, %arg7: memref<1x32xf32, #tpu.memory_space<vmem>>, %arg8: memref<2x32x96xf32, #tpu.memory_space<vmem>>, %arg9: memref<2x1x96xf32, #tpu.memory_space<vmem>>, %arg10: memref<2x32x32xf32, #tpu.memory_space<vmem>>, %arg11: memref<2x1x32xf32, #tpu.memory_space<vmem>>, %arg12: memref<2x1x32xf32, #tpu.memory_space<vmem>>, %arg13: memref<2x1x32xf32, #tpu.memory_space<vmem>>, %arg14: memref<2x32x64xf32, #tpu.memory_space<vmem>>, %arg15: memref<2x1x64xf32, #tpu.memory_space<vmem>>, %arg16: memref<2x64x32xf32, #tpu.memory_space<vmem>>, %arg17: memref<2x1x32xf32, #tpu.memory_space<vmem>>, %arg18: memref<2x1x32xf32, #tpu.memory_space<vmem>>, %arg19: memref<2x1x32xf32, #tpu.memory_space<vmem>>, %arg20: memref<32x3xf32, #tpu.memory_space<vmem>>, %arg21: memref<1x3xf32, #tpu.memory_space<vmem>>, %arg22: memref<32x64xf32, #tpu.memory_space<vmem>>, %arg23: memref<1x64xf32, #tpu.memory_space<vmem>>, %arg24: memref<1x64xf32, #tpu.memory_space<vmem>>, %arg25: memref<1x1xf32, #tpu.memory_space<vmem>>, %arg26: memref<32x8xf32, #tpu.memory_space<vmem>>, %arg27: memref<1x8xf32, #tpu.memory_space<vmem>>, %arg28: memref<1x16x3xf32, #tpu.memory_space<vmem>>, %arg29: memref<1x2x1xf32, #tpu.memory_space<vmem>>) attributes {dimension_semantics = [#tpu.dimension_semantics<parallel>], iteration_bounds = array<i64: 2>, scalar_prefetch = 0 : i64, scratch_operands = 0 : i64, tpu.core_type = #tpu.core_type<tc>, window_params = [{transform_indices = @transform_0, window_bounds = array<i64: 1, 16, 32>}, {transform_indices = @transform_1, window_bounds = array<i64: 1, 1, 16>}, {transform_indices = @transform_2, window_bounds = array<i64: 1, 2, 1>}, {transform_indices = @transform_3, window_bounds = array<i64: 1, 2, 1>}, {transform_indices = @transform_4, window_bounds = array<i64: 1, 2, 8>}, {pipeline_mode = #tpu.pipeline_mode<synchronous>, transform_indices = @transform_5, window_bounds = array<i64: 1, 32>}, {pipeline_mode = #tpu.pipeline_mode<synchronous>, transform_indices = @transform_6, window_bounds = array<i64: 1, 32>}, {pipeline_mode = #tpu.pipeline_mode<synchronous>, transform_indices = @transform_7, window_bounds = array<i64: 2, 32, 96>}, {pipeline_mode = #tpu.pipeline_mode<synchronous>, transform_indices = @transform_8, window_bounds = array<i64: 2, 1, 96>}, {pipeline_mode = #tpu.pipeline_mode<synchronous>, transform_indices = @transform_9, window_bounds = array<i64: 2, 32, 32>}, {pipeline_mode = #tpu.pipeline_mode<synchronous>, transform_indices = @transform_10, window_bounds = array<i64: 2, 1, 32>}, {pipeline_mode = #tpu.pipeline_mode<synchronous>, transform_indices = @transform_11, window_bounds = array<i64: 2, 1, 32>}, {pipeline_mode = #tpu.pipeline_mode<synchronous>, transform_indices = @transform_12, window_bounds = array<i64: 2, 1, 32>}, {pipeline_mode = #tpu.pipeline_mode<synchronous>, transform_indices = @transform_13, window_bounds = array<i64: 2, 32, 64>}, {pipeline_mode = #tpu.pipeline_mode<synchronous>, transform_indices = @transform_14, window_bounds = array<i64: 2, 1, 64>}, {pipeline_mode = #tpu.pipeline_mode<synchronous>, transform_indices = @transform_15, window_bounds = array<i64: 2, 64, 32>}, {pipeline_mode = #tpu.pipeline_mode<synchronous>, transform_indices = @transform_16, window_bounds = array<i64: 2, 1, 32>}, {pipeline_mode = #tpu.pipeline_mode<synchronous>, transform_indices = @transform_17, window_bounds = array<i64: 2, 1, 32>}, {pipeline_mode = #tpu.pipeline_mode<synchronous>, transform_indices = @transform_18, window_bounds = array<i64: 2, 1, 32>}, {pipeline_mode = #tpu.pipeline_mode<synchronous>, transform_indices = @transform_19, window_bounds = array<i64: 32, 3>}, {pipeline_mode = #tpu.pipeline_mode<synchronous>, transform_indices = @transform_20, window_bounds = array<i64: 1, 3>}, {pipeline_mode = #tpu.pipeline_mode<synchronous>, transform_indices = @transform_21, window_bounds = array<i64: 32, 64>}, {pipeline_mode = #tpu.pipeline_mode<synchronous>, transform_indices = @transform_22, window_bounds = array<i64: 1, 64>}, {pipeline_mode = #tpu.pipeline_mode<synchronous>, transform_indices = @transform_23, window_bounds = array<i64: 1, 64>}, {pipeline_mode = #tpu.pipeline_mode<synchronous>, transform_indices = @transform_24, window_bounds = array<i64: 1, 1>}, {pipeline_mode = #tpu.pipeline_mode<synchronous>, transform_indices = @transform_25, window_bounds = array<i64: 32, 8>}, {pipeline_mode = #tpu.pipeline_mode<synchronous>, transform_indices = @transform_26, window_bounds = array<i64: 1, 8>}, {transform_indices = @transform_27, window_bounds = array<i64: 1, 16, 3>}, {transform_indices = @transform_28, window_bounds = array<i64: 1, 2, 1>}]} {
    %c0 = arith.constant 0 : index
    %c0_0 = arith.constant 0 : index
    %c0_1 = arith.constant 0 : index
    %0 = vector.load %arg1[%c0, %c0_0, %c0_1] : memref<1x16x32xf32, #tpu.memory_space<vmem>>, vector<1x16x32xf32>
    %1 = vector.shape_cast %0 : vector<1x16x32xf32> to vector<16x32xf32>
    %c0_2 = arith.constant 0 : index
    %c0_3 = arith.constant 0 : index
    %2 = vector.load %arg6[%c0_2, %c0_3] : memref<1x32xf32, #tpu.memory_space<vmem>>, vector<1x32xf32>
    %c0_4 = arith.constant 0 : index
    %c0_5 = arith.constant 0 : index
    %3 = vector.load %arg7[%c0_4, %c0_5] : memref<1x32xf32, #tpu.memory_space<vmem>>, vector<1x32xf32>
    %cst = arith.constant dense<0.000000e+00> : vector<16xf32>
    %4 = vector.multi_reduction <add>, %1, %cst [1] : vector<16x32xf32> to vector<16xf32>
    %5 = vector.shape_cast %4 : vector<16xf32> to vector<16x1xf32>
    %cst_6 = arith.constant 3.200000e+01 : f32
    %6 = vector.broadcast %cst_6 : f32 to vector<16x1xf32>
    %7 = arith.divf %5, %6 : vector<16x1xf32>
    %8 = vector.broadcast %7 : vector<16x1xf32> to vector<16x32xf32>
    %9 = arith.subf %1, %8 : vector<16x32xf32>
    %10 = arith.mulf %9, %9 : vector<16x32xf32>
    %cst_7 = arith.constant dense<0.000000e+00> : vector<16xf32>
    %11 = vector.multi_reduction <add>, %10, %cst_7 [1] : vector<16x32xf32> to vector<16xf32>
    %12 = vector.shape_cast %11 : vector<16xf32> to vector<16x1xf32>
    %cst_8 = arith.constant 3.200000e+01 : f32
    %13 = vector.broadcast %cst_8 : f32 to vector<16x1xf32>
    %14 = arith.divf %12, %13 : vector<16x1xf32>
    %cst_9 = arith.constant 9.99999996E-13 : f32
    %15 = vector.broadcast %cst_9 : f32 to vector<16x1xf32>
    %16 = arith.addf %14, %15 : vector<16x1xf32>
    %17 = math.rsqrt %16 : vector<16x1xf32>
    %18 = vector.broadcast %17 : vector<16x1xf32> to vector<16x32xf32>
    %19 = arith.mulf %9, %18 : vector<16x32xf32>
    %20 = vector.broadcast %2 : vector<1x32xf32> to vector<16x32xf32>
    %21 = arith.mulf %19, %20 : vector<16x32xf32>
    %22 = vector.broadcast %3 : vector<1x32xf32> to vector<16x32xf32>
    %23 = arith.addf %21, %22 : vector<16x32xf32>
    %c0_10 = arith.constant 0 : index
    %c0_11 = arith.constant 0 : index
    %c0_12 = arith.constant 0 : index
    %24 = vector.load %arg2[%c0_10, %c0_11, %c0_12] : memref<1x1x16xf32, #tpu.memory_space<vmem>>, vector<1x1x16xf32>
    %25 = vector.shape_cast %24 : vector<1x1x16xf32> to vector<1x16xf32>
    %c0_13 = arith.constant 0 : index
    %c0_14 = arith.constant 0 : index
    %c0_15 = arith.constant 0 : index
    %26 = vector.load %arg8[%c0_13, %c0_14, %c0_15] : memref<2x32x96xf32, #tpu.memory_space<vmem>>, vector<1x32x96xf32>
    %27 = vector.shape_cast %26 : vector<1x32x96xf32> to vector<32x96xf32>
    %28 = arith.truncf %23 : vector<16x32xf32> to vector<16x32xbf16>
    %29 = arith.truncf %27 : vector<32x96xf32> to vector<32x96xbf16>
    %cst_16 = arith.constant dense<0.000000e+00> : vector<16x96xf32>
    %30 = tpu.matmul %28, %29, %cst_16 {dimension_numbers = #tpu.dot_dimension_numbers<[1], [0], [0], [1], [0, 0, 1, 1], [], []>} : vector<16x32xbf16>, vector<32x96xbf16>, vector<16x96xf32> -> vector<16x96xf32>
    %c0_17 = arith.constant 0 : index
    %c0_18 = arith.constant 0 : index
    %c0_19 = arith.constant 0 : index
    %31 = vector.load %arg9[%c0_17, %c0_18, %c0_19] : memref<2x1x96xf32, #tpu.memory_space<vmem>>, vector<1x1x96xf32>
    %32 = vector.shape_cast %31 : vector<1x1x96xf32> to vector<1x96xf32>
    %33 = vector.broadcast %32 : vector<1x96xf32> to vector<16x96xf32>
    %34 = arith.addf %30, %33 : vector<16x96xf32>
    %c0_20 = arith.constant 0 : index
    %c0_21 = arith.constant 0 : index
    %c0_22 = arith.constant 0 : index
    %35 = vector.load %arg11[%c0_20, %c0_21, %c0_22] : memref<2x1x32xf32, #tpu.memory_space<vmem>>, vector<1x1x32xf32>
    %36 = vector.shape_cast %35 : vector<1x1x32xf32> to vector<1x32xf32>
    %c0_23 = arith.constant 0 : index
    %c0_24 = arith.constant 0 : index
    %c0_25 = arith.constant 0 : index
    %37 = vector.load %arg10[%c0_23, %c0_24, %c0_25] : memref<2x32x32xf32, #tpu.memory_space<vmem>>, vector<1x32x32xf32>
    %38 = vector.shape_cast %37 : vector<1x32x32xf32> to vector<32x32xf32>
    %39 = vector.extract_strided_slice %34 {offsets = [0, 0], sizes = [16, 16], strides = [1, 1]} : vector<16x96xf32> to vector<16x16xf32>
    %40 = vector.extract_strided_slice %34 {offsets = [0, 32], sizes = [16, 16], strides = [1, 1]} : vector<16x96xf32> to vector<16x16xf32>
    %41 = vector.extract_strided_slice %34 {offsets = [0, 64], sizes = [16, 16], strides = [1, 1]} : vector<16x96xf32> to vector<16x16xf32>
    %42 = arith.truncf %39 : vector<16x16xf32> to vector<16x16xbf16>
    %43 = arith.truncf %40 : vector<16x16xf32> to vector<16x16xbf16>
    %cst_26 = arith.constant dense<0.000000e+00> : vector<16x16xf32>
    %44 = tpu.matmul %42, %43, %cst_26 {dimension_numbers = #tpu.dot_dimension_numbers<[1], [1], [0], [0], [0, 0, 1, 0], [], []>} : vector<16x16xbf16>, vector<16x16xbf16>, vector<16x16xf32> -> vector<16x16xf32>
    %cst_27 = arith.constant 2.500000e-01 : f32
    %45 = vector.broadcast %cst_27 : f32 to vector<16x16xf32>
    %46 = arith.mulf %44, %45 : vector<16x16xf32>
    %47 = vector.broadcast %25 : vector<1x16xf32> to vector<16x16xf32>
    %48 = arith.addf %46, %47 : vector<16x16xf32>
    %cst_28 = arith.constant dense<0xFF800000> : vector<16xf32>
    %49 = vector.multi_reduction <maximumf>, %48, %cst_28 [1] : vector<16x16xf32> to vector<16xf32>
    %50 = vector.shape_cast %49 : vector<16xf32> to vector<16x1xf32>
    %51 = vector.broadcast %50 : vector<16x1xf32> to vector<16x16xf32>
    %52 = arith.subf %48, %51 : vector<16x16xf32>
    %53 = math.exp %52 : vector<16x16xf32>
    %cst_29 = arith.constant dense<0.000000e+00> : vector<16xf32>
    %54 = vector.multi_reduction <add>, %53, %cst_29 [1] : vector<16x16xf32> to vector<16xf32>
    %55 = vector.shape_cast %54 : vector<16xf32> to vector<16x1xf32>
    %56 = tpu.reciprocal %55 {approx = true} : vector<16x1xf32> -> vector<16x1xf32>
    %57 = vector.broadcast %56 : vector<16x1xf32> to vector<16x16xf32>
    %58 = arith.mulf %53, %57 : vector<16x16xf32>
    %59 = arith.truncf %58 : vector<16x16xf32> to vector<16x16xbf16>
    %60 = arith.truncf %41 : vector<16x16xf32> to vector<16x16xbf16>
    %cst_30 = arith.constant dense<0.000000e+00> : vector<16x16xf32>
    %61 = tpu.matmul %59, %60, %cst_30 {dimension_numbers = #tpu.dot_dimension_numbers<[1], [0], [0], [1], [0, 0, 1, 1], [], []>} : vector<16x16xbf16>, vector<16x16xbf16>, vector<16x16xf32> -> vector<16x16xf32>
    %62 = vector.extract_strided_slice %38 {offsets = [0, 0], sizes = [16, 32], strides = [1, 1]} : vector<32x32xf32> to vector<16x32xf32>
    %63 = arith.truncf %61 : vector<16x16xf32> to vector<16x16xbf16>
    %64 = arith.truncf %62 : vector<16x32xf32> to vector<16x32xbf16>
    %cst_31 = arith.constant dense<0.000000e+00> : vector<16x32xf32>
    %65 = tpu.matmul %63, %64, %cst_31 {dimension_numbers = #tpu.dot_dimension_numbers<[1], [0], [0], [1], [0, 0, 1, 1], [], []>} : vector<16x16xbf16>, vector<16x32xbf16>, vector<16x32xf32> -> vector<16x32xf32>
    %66 = vector.broadcast %36 : vector<1x32xf32> to vector<16x32xf32>
    %67 = arith.addf %66, %65 : vector<16x32xf32>
    %68 = vector.extract_strided_slice %34 {offsets = [0, 16], sizes = [16, 16], strides = [1, 1]} : vector<16x96xf32> to vector<16x16xf32>
    %69 = vector.extract_strided_slice %34 {offsets = [0, 48], sizes = [16, 16], strides = [1, 1]} : vector<16x96xf32> to vector<16x16xf32>
    %70 = vector.extract_strided_slice %34 {offsets = [0, 80], sizes = [16, 16], strides = [1, 1]} : vector<16x96xf32> to vector<16x16xf32>
    %71 = arith.truncf %68 : vector<16x16xf32> to vector<16x16xbf16>
    %72 = arith.truncf %69 : vector<16x16xf32> to vector<16x16xbf16>
    %cst_32 = arith.constant dense<0.000000e+00> : vector<16x16xf32>
    %73 = tpu.matmul %71, %72, %cst_32 {dimension_numbers = #tpu.dot_dimension_numbers<[1], [1], [0], [0], [0, 0, 1, 0], [], []>} : vector<16x16xbf16>, vector<16x16xbf16>, vector<16x16xf32> -> vector<16x16xf32>
    %cst_33 = arith.constant 2.500000e-01 : f32
    %74 = vector.broadcast %cst_33 : f32 to vector<16x16xf32>
    %75 = arith.mulf %73, %74 : vector<16x16xf32>
    %76 = vector.broadcast %25 : vector<1x16xf32> to vector<16x16xf32>
    %77 = arith.addf %75, %76 : vector<16x16xf32>
    %cst_34 = arith.constant dense<0xFF800000> : vector<16xf32>
    %78 = vector.multi_reduction <maximumf>, %77, %cst_34 [1] : vector<16x16xf32> to vector<16xf32>
    %79 = vector.shape_cast %78 : vector<16xf32> to vector<16x1xf32>
    %80 = vector.broadcast %79 : vector<16x1xf32> to vector<16x16xf32>
    %81 = arith.subf %77, %80 : vector<16x16xf32>
    %82 = math.exp %81 : vector<16x16xf32>
    %cst_35 = arith.constant dense<0.000000e+00> : vector<16xf32>
    %83 = vector.multi_reduction <add>, %82, %cst_35 [1] : vector<16x16xf32> to vector<16xf32>
    %84 = vector.shape_cast %83 : vector<16xf32> to vector<16x1xf32>
    %85 = tpu.reciprocal %84 {approx = true} : vector<16x1xf32> -> vector<16x1xf32>
    %86 = vector.broadcast %85 : vector<16x1xf32> to vector<16x16xf32>
    %87 = arith.mulf %82, %86 : vector<16x16xf32>
    %88 = arith.truncf %87 : vector<16x16xf32> to vector<16x16xbf16>
    %89 = arith.truncf %70 : vector<16x16xf32> to vector<16x16xbf16>
    %cst_36 = arith.constant dense<0.000000e+00> : vector<16x16xf32>
    %90 = tpu.matmul %88, %89, %cst_36 {dimension_numbers = #tpu.dot_dimension_numbers<[1], [0], [0], [1], [0, 0, 1, 1], [], []>} : vector<16x16xbf16>, vector<16x16xbf16>, vector<16x16xf32> -> vector<16x16xf32>
    %91 = vector.extract_strided_slice %38 {offsets = [16, 0], sizes = [16, 32], strides = [1, 1]} : vector<32x32xf32> to vector<16x32xf32>
    %92 = arith.truncf %90 : vector<16x16xf32> to vector<16x16xbf16>
    %93 = arith.truncf %91 : vector<16x32xf32> to vector<16x32xbf16>
    %cst_37 = arith.constant dense<0.000000e+00> : vector<16x32xf32>
    %94 = tpu.matmul %92, %93, %cst_37 {dimension_numbers = #tpu.dot_dimension_numbers<[1], [0], [0], [1], [0, 0, 1, 1], [], []>} : vector<16x16xbf16>, vector<16x32xbf16>, vector<16x32xf32> -> vector<16x32xf32>
    %95 = arith.addf %67, %94 : vector<16x32xf32>
    %96 = arith.addf %23, %95 : vector<16x32xf32>
    %c0_38 = arith.constant 0 : index
    %c0_39 = arith.constant 0 : index
    %c0_40 = arith.constant 0 : index
    %97 = vector.load %arg12[%c0_38, %c0_39, %c0_40] : memref<2x1x32xf32, #tpu.memory_space<vmem>>, vector<1x1x32xf32>
    %98 = vector.shape_cast %97 : vector<1x1x32xf32> to vector<1x32xf32>
    %c0_41 = arith.constant 0 : index
    %c0_42 = arith.constant 0 : index
    %c0_43 = arith.constant 0 : index
    %99 = vector.load %arg13[%c0_41, %c0_42, %c0_43] : memref<2x1x32xf32, #tpu.memory_space<vmem>>, vector<1x1x32xf32>
    %100 = vector.shape_cast %99 : vector<1x1x32xf32> to vector<1x32xf32>
    %cst_44 = arith.constant dense<0.000000e+00> : vector<16xf32>
    %101 = vector.multi_reduction <add>, %96, %cst_44 [1] : vector<16x32xf32> to vector<16xf32>
    %102 = vector.shape_cast %101 : vector<16xf32> to vector<16x1xf32>
    %cst_45 = arith.constant 3.200000e+01 : f32
    %103 = vector.broadcast %cst_45 : f32 to vector<16x1xf32>
    %104 = arith.divf %102, %103 : vector<16x1xf32>
    %105 = vector.broadcast %104 : vector<16x1xf32> to vector<16x32xf32>
    %106 = arith.subf %96, %105 : vector<16x32xf32>
    %107 = arith.mulf %106, %106 : vector<16x32xf32>
    %cst_46 = arith.constant dense<0.000000e+00> : vector<16xf32>
    %108 = vector.multi_reduction <add>, %107, %cst_46 [1] : vector<16x32xf32> to vector<16xf32>
    %109 = vector.shape_cast %108 : vector<16xf32> to vector<16x1xf32>
    %cst_47 = arith.constant 3.200000e+01 : f32
    %110 = vector.broadcast %cst_47 : f32 to vector<16x1xf32>
    %111 = arith.divf %109, %110 : vector<16x1xf32>
    %cst_48 = arith.constant 9.99999996E-13 : f32
    %112 = vector.broadcast %cst_48 : f32 to vector<16x1xf32>
    %113 = arith.addf %111, %112 : vector<16x1xf32>
    %114 = math.rsqrt %113 : vector<16x1xf32>
    %115 = vector.broadcast %114 : vector<16x1xf32> to vector<16x32xf32>
    %116 = arith.mulf %106, %115 : vector<16x32xf32>
    %117 = vector.broadcast %98 : vector<1x32xf32> to vector<16x32xf32>
    %118 = arith.mulf %116, %117 : vector<16x32xf32>
    %119 = vector.broadcast %100 : vector<1x32xf32> to vector<16x32xf32>
    %120 = arith.addf %118, %119 : vector<16x32xf32>
    %c0_49 = arith.constant 0 : index
    %c0_50 = arith.constant 0 : index
    %c0_51 = arith.constant 0 : index
    %121 = vector.load %arg14[%c0_49, %c0_50, %c0_51] : memref<2x32x64xf32, #tpu.memory_space<vmem>>, vector<1x32x64xf32>
    %122 = vector.shape_cast %121 : vector<1x32x64xf32> to vector<32x64xf32>
    %123 = arith.truncf %120 : vector<16x32xf32> to vector<16x32xbf16>
    %124 = arith.truncf %122 : vector<32x64xf32> to vector<32x64xbf16>
    %cst_52 = arith.constant dense<0.000000e+00> : vector<16x64xf32>
    %125 = tpu.matmul %123, %124, %cst_52 {dimension_numbers = #tpu.dot_dimension_numbers<[1], [0], [0], [1], [0, 0, 1, 1], [], []>} : vector<16x32xbf16>, vector<32x64xbf16>, vector<16x64xf32> -> vector<16x64xf32>
    %c0_53 = arith.constant 0 : index
    %c0_54 = arith.constant 0 : index
    %c0_55 = arith.constant 0 : index
    %126 = vector.load %arg15[%c0_53, %c0_54, %c0_55] : memref<2x1x64xf32, #tpu.memory_space<vmem>>, vector<1x1x64xf32>
    %127 = vector.shape_cast %126 : vector<1x1x64xf32> to vector<1x64xf32>
    %128 = vector.broadcast %127 : vector<1x64xf32> to vector<16x64xf32>
    %129 = arith.addf %125, %128 : vector<16x64xf32>
    %cst_56 = arith.constant 5.000000e-01 : f32
    %130 = vector.broadcast %cst_56 : f32 to vector<16x64xf32>
    %131 = arith.mulf %130, %129 : vector<16x64xf32>
    %cst_57 = arith.constant 4.471500e-02 : f32
    %132 = vector.broadcast %cst_57 : f32 to vector<16x64xf32>
    %133 = arith.mulf %132, %129 : vector<16x64xf32>
    %134 = arith.mulf %133, %129 : vector<16x64xf32>
    %135 = arith.mulf %134, %129 : vector<16x64xf32>
    %136 = arith.addf %129, %135 : vector<16x64xf32>
    %cst_58 = arith.constant 0.797884583 : f32
    %137 = vector.broadcast %cst_58 : f32 to vector<16x64xf32>
    %138 = arith.mulf %137, %136 : vector<16x64xf32>
    %139 = math.tanh %138 : vector<16x64xf32>
    %cst_59 = arith.constant 1.000000e+00 : f32
    %140 = vector.broadcast %cst_59 : f32 to vector<16x64xf32>
    %141 = arith.addf %140, %139 : vector<16x64xf32>
    %142 = arith.mulf %131, %141 : vector<16x64xf32>
    %c0_60 = arith.constant 0 : index
    %c0_61 = arith.constant 0 : index
    %c0_62 = arith.constant 0 : index
    %143 = vector.load %arg16[%c0_60, %c0_61, %c0_62] : memref<2x64x32xf32, #tpu.memory_space<vmem>>, vector<1x64x32xf32>
    %144 = vector.shape_cast %143 : vector<1x64x32xf32> to vector<64x32xf32>
    %145 = arith.truncf %142 : vector<16x64xf32> to vector<16x64xbf16>
    %146 = arith.truncf %144 : vector<64x32xf32> to vector<64x32xbf16>
    %cst_63 = arith.constant dense<0.000000e+00> : vector<16x32xf32>
    %147 = tpu.matmul %145, %146, %cst_63 {dimension_numbers = #tpu.dot_dimension_numbers<[1], [0], [0], [1], [0, 0, 1, 1], [], []>} : vector<16x64xbf16>, vector<64x32xbf16>, vector<16x32xf32> -> vector<16x32xf32>
    %c0_64 = arith.constant 0 : index
    %c0_65 = arith.constant 0 : index
    %c0_66 = arith.constant 0 : index
    %148 = vector.load %arg17[%c0_64, %c0_65, %c0_66] : memref<2x1x32xf32, #tpu.memory_space<vmem>>, vector<1x1x32xf32>
    %149 = vector.shape_cast %148 : vector<1x1x32xf32> to vector<1x32xf32>
    %150 = vector.broadcast %149 : vector<1x32xf32> to vector<16x32xf32>
    %151 = arith.addf %147, %150 : vector<16x32xf32>
    %152 = arith.addf %120, %151 : vector<16x32xf32>
    %c0_67 = arith.constant 0 : index
    %c0_68 = arith.constant 0 : index
    %c0_69 = arith.constant 0 : index
    %153 = vector.load %arg18[%c0_67, %c0_68, %c0_69] : memref<2x1x32xf32, #tpu.memory_space<vmem>>, vector<1x1x32xf32>
    %154 = vector.shape_cast %153 : vector<1x1x32xf32> to vector<1x32xf32>
    %c0_70 = arith.constant 0 : index
    %c0_71 = arith.constant 0 : index
    %c0_72 = arith.constant 0 : index
    %155 = vector.load %arg19[%c0_70, %c0_71, %c0_72] : memref<2x1x32xf32, #tpu.memory_space<vmem>>, vector<1x1x32xf32>
    %156 = vector.shape_cast %155 : vector<1x1x32xf32> to vector<1x32xf32>
    %cst_73 = arith.constant dense<0.000000e+00> : vector<16xf32>
    %157 = vector.multi_reduction <add>, %152, %cst_73 [1] : vector<16x32xf32> to vector<16xf32>
    %158 = vector.shape_cast %157 : vector<16xf32> to vector<16x1xf32>
    %cst_74 = arith.constant 3.200000e+01 : f32
    %159 = vector.broadcast %cst_74 : f32 to vector<16x1xf32>
    %160 = arith.divf %158, %159 : vector<16x1xf32>
    %161 = vector.broadcast %160 : vector<16x1xf32> to vector<16x32xf32>
    %162 = arith.subf %152, %161 : vector<16x32xf32>
    %163 = arith.mulf %162, %162 : vector<16x32xf32>
    %cst_75 = arith.constant dense<0.000000e+00> : vector<16xf32>
    %164 = vector.multi_reduction <add>, %163, %cst_75 [1] : vector<16x32xf32> to vector<16xf32>
    %165 = vector.shape_cast %164 : vector<16xf32> to vector<16x1xf32>
    %cst_76 = arith.constant 3.200000e+01 : f32
    %166 = vector.broadcast %cst_76 : f32 to vector<16x1xf32>
    %167 = arith.divf %165, %166 : vector<16x1xf32>
    %cst_77 = arith.constant 9.99999996E-13 : f32
    %168 = vector.broadcast %cst_77 : f32 to vector<16x1xf32>
    %169 = arith.addf %167, %168 : vector<16x1xf32>
    %170 = math.rsqrt %169 : vector<16x1xf32>
    %171 = vector.broadcast %170 : vector<16x1xf32> to vector<16x32xf32>
    %172 = arith.mulf %162, %171 : vector<16x32xf32>
    %173 = vector.broadcast %154 : vector<1x32xf32> to vector<16x32xf32>
    %174 = arith.mulf %172, %173 : vector<16x32xf32>
    %175 = vector.broadcast %156 : vector<1x32xf32> to vector<16x32xf32>
    %176 = arith.addf %174, %175 : vector<16x32xf32>
    %c1 = arith.constant 1 : index
    %c0_78 = arith.constant 0 : index
    %c0_79 = arith.constant 0 : index
    %177 = vector.load %arg8[%c1, %c0_78, %c0_79] : memref<2x32x96xf32, #tpu.memory_space<vmem>>, vector<1x32x96xf32>
    %178 = vector.shape_cast %177 : vector<1x32x96xf32> to vector<32x96xf32>
    %179 = arith.truncf %176 : vector<16x32xf32> to vector<16x32xbf16>
    %180 = arith.truncf %178 : vector<32x96xf32> to vector<32x96xbf16>
    %cst_80 = arith.constant dense<0.000000e+00> : vector<16x96xf32>
    %181 = tpu.matmul %179, %180, %cst_80 {dimension_numbers = #tpu.dot_dimension_numbers<[1], [0], [0], [1], [0, 0, 1, 1], [], []>} : vector<16x32xbf16>, vector<32x96xbf16>, vector<16x96xf32> -> vector<16x96xf32>
    %c1_81 = arith.constant 1 : index
    %c0_82 = arith.constant 0 : index
    %c0_83 = arith.constant 0 : index
    %182 = vector.load %arg9[%c1_81, %c0_82, %c0_83] : memref<2x1x96xf32, #tpu.memory_space<vmem>>, vector<1x1x96xf32>
    %183 = vector.shape_cast %182 : vector<1x1x96xf32> to vector<1x96xf32>
    %184 = vector.broadcast %183 : vector<1x96xf32> to vector<16x96xf32>
    %185 = arith.addf %181, %184 : vector<16x96xf32>
    %c1_84 = arith.constant 1 : index
    %c0_85 = arith.constant 0 : index
    %c0_86 = arith.constant 0 : index
    %186 = vector.load %arg11[%c1_84, %c0_85, %c0_86] : memref<2x1x32xf32, #tpu.memory_space<vmem>>, vector<1x1x32xf32>
    %187 = vector.shape_cast %186 : vector<1x1x32xf32> to vector<1x32xf32>
    %c1_87 = arith.constant 1 : index
    %c0_88 = arith.constant 0 : index
    %c0_89 = arith.constant 0 : index
    %188 = vector.load %arg10[%c1_87, %c0_88, %c0_89] : memref<2x32x32xf32, #tpu.memory_space<vmem>>, vector<1x32x32xf32>
    %189 = vector.shape_cast %188 : vector<1x32x32xf32> to vector<32x32xf32>
    %190 = vector.extract_strided_slice %185 {offsets = [0, 0], sizes = [16, 16], strides = [1, 1]} : vector<16x96xf32> to vector<16x16xf32>
    %191 = vector.extract_strided_slice %185 {offsets = [0, 32], sizes = [16, 16], strides = [1, 1]} : vector<16x96xf32> to vector<16x16xf32>
    %192 = vector.extract_strided_slice %185 {offsets = [0, 64], sizes = [16, 16], strides = [1, 1]} : vector<16x96xf32> to vector<16x16xf32>
    %193 = arith.truncf %190 : vector<16x16xf32> to vector<16x16xbf16>
    %194 = arith.truncf %191 : vector<16x16xf32> to vector<16x16xbf16>
    %cst_90 = arith.constant dense<0.000000e+00> : vector<16x16xf32>
    %195 = tpu.matmul %193, %194, %cst_90 {dimension_numbers = #tpu.dot_dimension_numbers<[1], [1], [0], [0], [0, 0, 1, 0], [], []>} : vector<16x16xbf16>, vector<16x16xbf16>, vector<16x16xf32> -> vector<16x16xf32>
    %cst_91 = arith.constant 2.500000e-01 : f32
    %196 = vector.broadcast %cst_91 : f32 to vector<16x16xf32>
    %197 = arith.mulf %195, %196 : vector<16x16xf32>
    %198 = vector.broadcast %25 : vector<1x16xf32> to vector<16x16xf32>
    %199 = arith.addf %197, %198 : vector<16x16xf32>
    %cst_92 = arith.constant dense<0xFF800000> : vector<16xf32>
    %200 = vector.multi_reduction <maximumf>, %199, %cst_92 [1] : vector<16x16xf32> to vector<16xf32>
    %201 = vector.shape_cast %200 : vector<16xf32> to vector<16x1xf32>
    %202 = vector.broadcast %201 : vector<16x1xf32> to vector<16x16xf32>
    %203 = arith.subf %199, %202 : vector<16x16xf32>
    %204 = math.exp %203 : vector<16x16xf32>
    %cst_93 = arith.constant dense<0.000000e+00> : vector<16xf32>
    %205 = vector.multi_reduction <add>, %204, %cst_93 [1] : vector<16x16xf32> to vector<16xf32>
    %206 = vector.shape_cast %205 : vector<16xf32> to vector<16x1xf32>
    %207 = tpu.reciprocal %206 {approx = true} : vector<16x1xf32> -> vector<16x1xf32>
    %208 = vector.broadcast %207 : vector<16x1xf32> to vector<16x16xf32>
    %209 = arith.mulf %204, %208 : vector<16x16xf32>
    %210 = arith.truncf %209 : vector<16x16xf32> to vector<16x16xbf16>
    %211 = arith.truncf %192 : vector<16x16xf32> to vector<16x16xbf16>
    %cst_94 = arith.constant dense<0.000000e+00> : vector<16x16xf32>
    %212 = tpu.matmul %210, %211, %cst_94 {dimension_numbers = #tpu.dot_dimension_numbers<[1], [0], [0], [1], [0, 0, 1, 1], [], []>} : vector<16x16xbf16>, vector<16x16xbf16>, vector<16x16xf32> -> vector<16x16xf32>
    %213 = vector.extract_strided_slice %189 {offsets = [0, 0], sizes = [16, 32], strides = [1, 1]} : vector<32x32xf32> to vector<16x32xf32>
    %214 = arith.truncf %212 : vector<16x16xf32> to vector<16x16xbf16>
    %215 = arith.truncf %213 : vector<16x32xf32> to vector<16x32xbf16>
    %cst_95 = arith.constant dense<0.000000e+00> : vector<16x32xf32>
    %216 = tpu.matmul %214, %215, %cst_95 {dimension_numbers = #tpu.dot_dimension_numbers<[1], [0], [0], [1], [0, 0, 1, 1], [], []>} : vector<16x16xbf16>, vector<16x32xbf16>, vector<16x32xf32> -> vector<16x32xf32>
    %217 = vector.broadcast %187 : vector<1x32xf32> to vector<16x32xf32>
    %218 = arith.addf %217, %216 : vector<16x32xf32>
    %219 = vector.extract_strided_slice %185 {offsets = [0, 16], sizes = [16, 16], strides = [1, 1]} : vector<16x96xf32> to vector<16x16xf32>
    %220 = vector.extract_strided_slice %185 {offsets = [0, 48], sizes = [16, 16], strides = [1, 1]} : vector<16x96xf32> to vector<16x16xf32>
    %221 = vector.extract_strided_slice %185 {offsets = [0, 80], sizes = [16, 16], strides = [1, 1]} : vector<16x96xf32> to vector<16x16xf32>
    %222 = arith.truncf %219 : vector<16x16xf32> to vector<16x16xbf16>
    %223 = arith.truncf %220 : vector<16x16xf32> to vector<16x16xbf16>
    %cst_96 = arith.constant dense<0.000000e+00> : vector<16x16xf32>
    %224 = tpu.matmul %222, %223, %cst_96 {dimension_numbers = #tpu.dot_dimension_numbers<[1], [1], [0], [0], [0, 0, 1, 0], [], []>} : vector<16x16xbf16>, vector<16x16xbf16>, vector<16x16xf32> -> vector<16x16xf32>
    %cst_97 = arith.constant 2.500000e-01 : f32
    %225 = vector.broadcast %cst_97 : f32 to vector<16x16xf32>
    %226 = arith.mulf %224, %225 : vector<16x16xf32>
    %227 = vector.broadcast %25 : vector<1x16xf32> to vector<16x16xf32>
    %228 = arith.addf %226, %227 : vector<16x16xf32>
    %cst_98 = arith.constant dense<0xFF800000> : vector<16xf32>
    %229 = vector.multi_reduction <maximumf>, %228, %cst_98 [1] : vector<16x16xf32> to vector<16xf32>
    %230 = vector.shape_cast %229 : vector<16xf32> to vector<16x1xf32>
    %231 = vector.broadcast %230 : vector<16x1xf32> to vector<16x16xf32>
    %232 = arith.subf %228, %231 : vector<16x16xf32>
    %233 = math.exp %232 : vector<16x16xf32>
    %cst_99 = arith.constant dense<0.000000e+00> : vector<16xf32>
    %234 = vector.multi_reduction <add>, %233, %cst_99 [1] : vector<16x16xf32> to vector<16xf32>
    %235 = vector.shape_cast %234 : vector<16xf32> to vector<16x1xf32>
    %236 = tpu.reciprocal %235 {approx = true} : vector<16x1xf32> -> vector<16x1xf32>
    %237 = vector.broadcast %236 : vector<16x1xf32> to vector<16x16xf32>
    %238 = arith.mulf %233, %237 : vector<16x16xf32>
    %239 = arith.truncf %238 : vector<16x16xf32> to vector<16x16xbf16>
    %240 = arith.truncf %221 : vector<16x16xf32> to vector<16x16xbf16>
    %cst_100 = arith.constant dense<0.000000e+00> : vector<16x16xf32>
    %241 = tpu.matmul %239, %240, %cst_100 {dimension_numbers = #tpu.dot_dimension_numbers<[1], [0], [0], [1], [0, 0, 1, 1], [], []>} : vector<16x16xbf16>, vector<16x16xbf16>, vector<16x16xf32> -> vector<16x16xf32>
    %242 = vector.extract_strided_slice %189 {offsets = [16, 0], sizes = [16, 32], strides = [1, 1]} : vector<32x32xf32> to vector<16x32xf32>
    %243 = arith.truncf %241 : vector<16x16xf32> to vector<16x16xbf16>
    %244 = arith.truncf %242 : vector<16x32xf32> to vector<16x32xbf16>
    %cst_101 = arith.constant dense<0.000000e+00> : vector<16x32xf32>
    %245 = tpu.matmul %243, %244, %cst_101 {dimension_numbers = #tpu.dot_dimension_numbers<[1], [0], [0], [1], [0, 0, 1, 1], [], []>} : vector<16x16xbf16>, vector<16x32xbf16>, vector<16x32xf32> -> vector<16x32xf32>
    %246 = arith.addf %218, %245 : vector<16x32xf32>
    %247 = arith.addf %176, %246 : vector<16x32xf32>
    %c1_102 = arith.constant 1 : index
    %c0_103 = arith.constant 0 : index
    %c0_104 = arith.constant 0 : index
    %248 = vector.load %arg12[%c1_102, %c0_103, %c0_104] : memref<2x1x32xf32, #tpu.memory_space<vmem>>, vector<1x1x32xf32>
    %249 = vector.shape_cast %248 : vector<1x1x32xf32> to vector<1x32xf32>
    %c1_105 = arith.constant 1 : index
    %c0_106 = arith.constant 0 : index
    %c0_107 = arith.constant 0 : index
    %250 = vector.load %arg13[%c1_105, %c0_106, %c0_107] : memref<2x1x32xf32, #tpu.memory_space<vmem>>, vector<1x1x32xf32>
    %251 = vector.shape_cast %250 : vector<1x1x32xf32> to vector<1x32xf32>
    %cst_108 = arith.constant dense<0.000000e+00> : vector<16xf32>
    %252 = vector.multi_reduction <add>, %247, %cst_108 [1] : vector<16x32xf32> to vector<16xf32>
    %253 = vector.shape_cast %252 : vector<16xf32> to vector<16x1xf32>
    %cst_109 = arith.constant 3.200000e+01 : f32
    %254 = vector.broadcast %cst_109 : f32 to vector<16x1xf32>
    %255 = arith.divf %253, %254 : vector<16x1xf32>
    %256 = vector.broadcast %255 : vector<16x1xf32> to vector<16x32xf32>
    %257 = arith.subf %247, %256 : vector<16x32xf32>
    %258 = arith.mulf %257, %257 : vector<16x32xf32>
    %cst_110 = arith.constant dense<0.000000e+00> : vector<16xf32>
    %259 = vector.multi_reduction <add>, %258, %cst_110 [1] : vector<16x32xf32> to vector<16xf32>
    %260 = vector.shape_cast %259 : vector<16xf32> to vector<16x1xf32>
    %cst_111 = arith.constant 3.200000e+01 : f32
    %261 = vector.broadcast %cst_111 : f32 to vector<16x1xf32>
    %262 = arith.divf %260, %261 : vector<16x1xf32>
    %cst_112 = arith.constant 9.99999996E-13 : f32
    %263 = vector.broadcast %cst_112 : f32 to vector<16x1xf32>
    %264 = arith.addf %262, %263 : vector<16x1xf32>
    %265 = math.rsqrt %264 : vector<16x1xf32>
    %266 = vector.broadcast %265 : vector<16x1xf32> to vector<16x32xf32>
    %267 = arith.mulf %257, %266 : vector<16x32xf32>
    %268 = vector.broadcast %249 : vector<1x32xf32> to vector<16x32xf32>
    %269 = arith.mulf %267, %268 : vector<16x32xf32>
    %270 = vector.broadcast %251 : vector<1x32xf32> to vector<16x32xf32>
    %271 = arith.addf %269, %270 : vector<16x32xf32>
    %c1_113 = arith.constant 1 : index
    %c0_114 = arith.constant 0 : index
    %c0_115 = arith.constant 0 : index
    %272 = vector.load %arg14[%c1_113, %c0_114, %c0_115] : memref<2x32x64xf32, #tpu.memory_space<vmem>>, vector<1x32x64xf32>
    %273 = vector.shape_cast %272 : vector<1x32x64xf32> to vector<32x64xf32>
    %274 = arith.truncf %271 : vector<16x32xf32> to vector<16x32xbf16>
    %275 = arith.truncf %273 : vector<32x64xf32> to vector<32x64xbf16>
    %cst_116 = arith.constant dense<0.000000e+00> : vector<16x64xf32>
    %276 = tpu.matmul %274, %275, %cst_116 {dimension_numbers = #tpu.dot_dimension_numbers<[1], [0], [0], [1], [0, 0, 1, 1], [], []>} : vector<16x32xbf16>, vector<32x64xbf16>, vector<16x64xf32> -> vector<16x64xf32>
    %c1_117 = arith.constant 1 : index
    %c0_118 = arith.constant 0 : index
    %c0_119 = arith.constant 0 : index
    %277 = vector.load %arg15[%c1_117, %c0_118, %c0_119] : memref<2x1x64xf32, #tpu.memory_space<vmem>>, vector<1x1x64xf32>
    %278 = vector.shape_cast %277 : vector<1x1x64xf32> to vector<1x64xf32>
    %279 = vector.broadcast %278 : vector<1x64xf32> to vector<16x64xf32>
    %280 = arith.addf %276, %279 : vector<16x64xf32>
    %cst_120 = arith.constant 5.000000e-01 : f32
    %281 = vector.broadcast %cst_120 : f32 to vector<16x64xf32>
    %282 = arith.mulf %281, %280 : vector<16x64xf32>
    %cst_121 = arith.constant 4.471500e-02 : f32
    %283 = vector.broadcast %cst_121 : f32 to vector<16x64xf32>
    %284 = arith.mulf %283, %280 : vector<16x64xf32>
    %285 = arith.mulf %284, %280 : vector<16x64xf32>
    %286 = arith.mulf %285, %280 : vector<16x64xf32>
    %287 = arith.addf %280, %286 : vector<16x64xf32>
    %cst_122 = arith.constant 0.797884583 : f32
    %288 = vector.broadcast %cst_122 : f32 to vector<16x64xf32>
    %289 = arith.mulf %288, %287 : vector<16x64xf32>
    %290 = math.tanh %289 : vector<16x64xf32>
    %cst_123 = arith.constant 1.000000e+00 : f32
    %291 = vector.broadcast %cst_123 : f32 to vector<16x64xf32>
    %292 = arith.addf %291, %290 : vector<16x64xf32>
    %293 = arith.mulf %282, %292 : vector<16x64xf32>
    %c1_124 = arith.constant 1 : index
    %c0_125 = arith.constant 0 : index
    %c0_126 = arith.constant 0 : index
    %294 = vector.load %arg16[%c1_124, %c0_125, %c0_126] : memref<2x64x32xf32, #tpu.memory_space<vmem>>, vector<1x64x32xf32>
    %295 = vector.shape_cast %294 : vector<1x64x32xf32> to vector<64x32xf32>
    %296 = arith.truncf %293 : vector<16x64xf32> to vector<16x64xbf16>
    %297 = arith.truncf %295 : vector<64x32xf32> to vector<64x32xbf16>
    %cst_127 = arith.constant dense<0.000000e+00> : vector<16x32xf32>
    %298 = tpu.matmul %296, %297, %cst_127 {dimension_numbers = #tpu.dot_dimension_numbers<[1], [0], [0], [1], [0, 0, 1, 1], [], []>} : vector<16x64xbf16>, vector<64x32xbf16>, vector<16x32xf32> -> vector<16x32xf32>
    %c1_128 = arith.constant 1 : index
    %c0_129 = arith.constant 0 : index
    %c0_130 = arith.constant 0 : index
    %299 = vector.load %arg17[%c1_128, %c0_129, %c0_130] : memref<2x1x32xf32, #tpu.memory_space<vmem>>, vector<1x1x32xf32>
    %300 = vector.shape_cast %299 : vector<1x1x32xf32> to vector<1x32xf32>
    %301 = vector.broadcast %300 : vector<1x32xf32> to vector<16x32xf32>
    %302 = arith.addf %298, %301 : vector<16x32xf32>
    %303 = arith.addf %271, %302 : vector<16x32xf32>
    %c1_131 = arith.constant 1 : index
    %c0_132 = arith.constant 0 : index
    %c0_133 = arith.constant 0 : index
    %304 = vector.load %arg18[%c1_131, %c0_132, %c0_133] : memref<2x1x32xf32, #tpu.memory_space<vmem>>, vector<1x1x32xf32>
    %305 = vector.shape_cast %304 : vector<1x1x32xf32> to vector<1x32xf32>
    %c1_134 = arith.constant 1 : index
    %c0_135 = arith.constant 0 : index
    %c0_136 = arith.constant 0 : index
    %306 = vector.load %arg19[%c1_134, %c0_135, %c0_136] : memref<2x1x32xf32, #tpu.memory_space<vmem>>, vector<1x1x32xf32>
    %307 = vector.shape_cast %306 : vector<1x1x32xf32> to vector<1x32xf32>
    %cst_137 = arith.constant dense<0.000000e+00> : vector<16xf32>
    %308 = vector.multi_reduction <add>, %303, %cst_137 [1] : vector<16x32xf32> to vector<16xf32>
    %309 = vector.shape_cast %308 : vector<16xf32> to vector<16x1xf32>
    %cst_138 = arith.constant 3.200000e+01 : f32
    %310 = vector.broadcast %cst_138 : f32 to vector<16x1xf32>
    %311 = arith.divf %309, %310 : vector<16x1xf32>
    %312 = vector.broadcast %311 : vector<16x1xf32> to vector<16x32xf32>
    %313 = arith.subf %303, %312 : vector<16x32xf32>
    %314 = arith.mulf %313, %313 : vector<16x32xf32>
    %cst_139 = arith.constant dense<0.000000e+00> : vector<16xf32>
    %315 = vector.multi_reduction <add>, %314, %cst_139 [1] : vector<16x32xf32> to vector<16xf32>
    %316 = vector.shape_cast %315 : vector<16xf32> to vector<16x1xf32>
    %cst_140 = arith.constant 3.200000e+01 : f32
    %317 = vector.broadcast %cst_140 : f32 to vector<16x1xf32>
    %318 = arith.divf %316, %317 : vector<16x1xf32>
    %cst_141 = arith.constant 9.99999996E-13 : f32
    %319 = vector.broadcast %cst_141 : f32 to vector<16x1xf32>
    %320 = arith.addf %318, %319 : vector<16x1xf32>
    %321 = math.rsqrt %320 : vector<16x1xf32>
    %322 = vector.broadcast %321 : vector<16x1xf32> to vector<16x32xf32>
    %323 = arith.mulf %313, %322 : vector<16x32xf32>
    %324 = vector.broadcast %305 : vector<1x32xf32> to vector<16x32xf32>
    %325 = arith.mulf %323, %324 : vector<16x32xf32>
    %326 = vector.broadcast %307 : vector<1x32xf32> to vector<16x32xf32>
    %327 = arith.addf %325, %326 : vector<16x32xf32>
    %c0_142 = arith.constant 0 : index
    %c0_143 = arith.constant 0 : index
    %328 = vector.load %arg20[%c0_142, %c0_143] : memref<32x3xf32, #tpu.memory_space<vmem>>, vector<32x3xf32>
    %329 = arith.truncf %327 : vector<16x32xf32> to vector<16x32xbf16>
    %330 = arith.truncf %328 : vector<32x3xf32> to vector<32x3xbf16>
    %cst_144 = arith.constant dense<0.000000e+00> : vector<16x3xf32>
    %331 = tpu.matmul %329, %330, %cst_144 {dimension_numbers = #tpu.dot_dimension_numbers<[1], [0], [0], [1], [0, 0, 1, 1], [], []>} : vector<16x32xbf16>, vector<32x3xbf16>, vector<16x3xf32> -> vector<16x3xf32>
    %c0_145 = arith.constant 0 : index
    %c0_146 = arith.constant 0 : index
    %332 = vector.load %arg21[%c0_145, %c0_146] : memref<1x3xf32, #tpu.memory_space<vmem>>, vector<1x3xf32>
    %333 = vector.broadcast %332 : vector<1x3xf32> to vector<16x3xf32>
    %334 = arith.addf %331, %333 : vector<16x3xf32>
    %c0_147 = arith.constant 0 : index
    %c0_148 = arith.constant 0 : index
    %c0_149 = arith.constant 0 : index
    %335 = vector.load %arg28[%c0_147, %c0_148, %c0_149] : memref<1x16x3xf32, #tpu.memory_space<vmem>>, vector<1x16x3xf32>
    %336 = vector.shape_cast %335 : vector<1x16x3xf32> to vector<16x3xf32>
    %337 = vector.shape_cast %334 : vector<16x3xf32> to vector<1x16x3xf32>
    tpu.vector_store %arg28[%c0_147, %c0_148, %c0_149], %337 {strides = array<i32>} : memref<1x16x3xf32, #tpu.memory_space<vmem>>, vector<1x16x3xf32>,
    %c0_150 = arith.constant 0 : index
    %c0_151 = arith.constant 0 : index
    %338 = vector.load %arg22[%c0_150, %c0_151] : memref<32x64xf32, #tpu.memory_space<vmem>>, vector<32x64xf32>
    %339 = arith.truncf %327 : vector<16x32xf32> to vector<16x32xbf16>
    %340 = arith.truncf %338 : vector<32x64xf32> to vector<32x64xbf16>
    %cst_152 = arith.constant dense<0.000000e+00> : vector<16x64xf32>
    %341 = tpu.matmul %339, %340, %cst_152 {dimension_numbers = #tpu.dot_dimension_numbers<[1], [0], [0], [1], [0, 0, 1, 1], [], []>} : vector<16x32xbf16>, vector<32x64xbf16>, vector<16x64xf32> -> vector<16x64xf32>
    %c0_153 = arith.constant 0 : index
    %c0_154 = arith.constant 0 : index
    %342 = vector.load %arg23[%c0_153, %c0_154] : memref<1x64xf32, #tpu.memory_space<vmem>>, vector<1x64xf32>
    %343 = vector.broadcast %342 : vector<1x64xf32> to vector<16x64xf32>
    %344 = arith.addf %341, %343 : vector<16x64xf32>
    %345 = math.tanh %344 : vector<16x64xf32>
    %c0_155 = arith.constant 0 : index
    %c0_156 = arith.constant 0 : index
    %346 = vector.load %arg24[%c0_155, %c0_156] : memref<1x64xf32, #tpu.memory_space<vmem>>, vector<1x64xf32>
    %347 = arith.truncf %346 : vector<1x64xf32> to vector<1x64xbf16>
    %348 = arith.truncf %345 : vector<16x64xf32> to vector<16x64xbf16>
    %cst_157 = arith.constant dense<0.000000e+00> : vector<1x16xf32>
    %349 = tpu.matmul %347, %348, %cst_157 {dimension_numbers = #tpu.dot_dimension_numbers<[1], [1], [0], [0], [0, 0, 1, 0], [], []>} : vector<1x64xbf16>, vector<16x64xbf16>, vector<1x16xf32> -> vector<1x16xf32>
    %c0_158 = arith.constant 0 : index
    %c0_159 = arith.constant 0 : index
    %350 = vector.load %arg25[%c0_158, %c0_159] : memref<1x1xf32, #tpu.memory_space<vmem>>, vector<1x1xf32>
    %351 = vector.broadcast %350 : vector<1x1xf32> to vector<1x16xf32>
    %352 = arith.addf %349, %351 : vector<1x16xf32>
    %c0_160 = arith.constant 0 : index
    %c0_161 = arith.constant 0 : index
    %c0_162 = arith.constant 0 : index
    %353 = vector.load %arg3[%c0_160, %c0_161, %c0_162] : memref<1x2x1xi32, #tpu.memory_space<vmem>>, vector<1x2x1xi32>
    %354 = vector.shape_cast %353 : vector<1x2x1xi32> to vector<2x1xi32>
    %c0_163 = arith.constant 0 : index
    %c0_164 = arith.constant 0 : index
    %c0_165 = arith.constant 0 : index
    %355 = vector.load %arg4[%c0_163, %c0_164, %c0_165] : memref<1x2x1xi32, #tpu.memory_space<vmem>>, vector<1x2x1xi32>
    %356 = vector.shape_cast %355 : vector<1x2x1xi32> to vector<2x1xi32>
    %357 = tpu.iota {dimensions = array<i32: 1>} : vector<2x16xi32>
    %358 = vector.broadcast %354 : vector<2x1xi32> to vector<2x16xi32>
    %359 = arith.cmpi sge, %357, %358 : vector<2x16xi32>
    %360 = vector.broadcast %356 : vector<2x1xi32> to vector<2x16xi32>
    %361 = arith.cmpi slt, %357, %360 : vector<2x16xi32>
    %362 = arith.andi %359, %361 : vector<2x16xi1>
    %363 = vector.shape_cast %352 : vector<1x16xf32> to vector<1x16xf32>
    %364 = vector.broadcast %363 : vector<1x16xf32> to vector<2x16xf32>
    %cst_166 = arith.constant -1.000000e+30 : f32
    %365 = vector.broadcast %cst_166 : f32 to vector<2x16xf32>
    %366 = arith.select %362, %364, %365 : vector<2x16xi1>, vector<2x16xf32>
    %cst_167 = arith.constant dense<0xFF800000> : vector<2xf32>
    %367 = vector.multi_reduction <maximumf>, %366, %cst_167 [1] : vector<2x16xf32> to vector<2xf32>
    %368 = vector.shape_cast %367 : vector<2xf32> to vector<2x1xf32>
    %369 = vector.broadcast %368 : vector<2x1xf32> to vector<2x16xf32>
    %370 = arith.subf %366, %369 : vector<2x16xf32>
    %371 = math.exp %370 : vector<2x16xf32>
    %cst_168 = arith.constant dense<0.000000e+00> : vector<2xf32>
    %372 = vector.multi_reduction <add>, %371, %cst_168 [1] : vector<2x16xf32> to vector<2xf32>
    %373 = vector.shape_cast %372 : vector<2xf32> to vector<2x1xf32>
    %374 = tpu.reciprocal %373 {approx = true} : vector<2x1xf32> -> vector<2x1xf32>
    %375 = vector.broadcast %374 : vector<2x1xf32> to vector<2x16xf32>
    %376 = arith.mulf %371, %375 : vector<2x16xf32>
    %377 = arith.truncf %376 : vector<2x16xf32> to vector<2x16xbf16>
    %378 = arith.truncf %327 : vector<16x32xf32> to vector<16x32xbf16>
    %cst_169 = arith.constant dense<0.000000e+00> : vector<2x32xf32>
    %379 = tpu.matmul %377, %378, %cst_169 {dimension_numbers = #tpu.dot_dimension_numbers<[1], [0], [0], [1], [0, 0, 1, 1], [], []>} : vector<2x16xbf16>, vector<16x32xbf16>, vector<2x32xf32> -> vector<2x32xf32>
    %c0_170 = arith.constant 0 : index
    %c0_171 = arith.constant 0 : index
    %380 = vector.load %arg26[%c0_170, %c0_171] : memref<32x8xf32, #tpu.memory_space<vmem>>, vector<32x8xf32>
    %381 = arith.truncf %379 : vector<2x32xf32> to vector<2x32xbf16>
    %382 = arith.truncf %380 : vector<32x8xf32> to vector<32x8xbf16>
    %cst_172 = arith.constant dense<0.000000e+00> : vector<2x8xf32>
    %383 = tpu.matmul %381, %382, %cst_172 {dimension_numbers = #tpu.dot_dimension_numbers<[1], [0], [0], [1], [0, 0, 1, 1], [], []>} : vector<2x32xbf16>, vector<32x8xbf16>, vector<2x8xf32> -> vector<2x8xf32>
    %c0_173 = arith.constant 0 : index
    %c0_174 = arith.constant 0 : index
    %384 = vector.load %arg27[%c0_173, %c0_174] : memref<1x8xf32, #tpu.memory_space<vmem>>, vector<1x8xf32>
    %385 = vector.broadcast %384 : vector<1x8xf32> to vector<2x8xf32>
    %386 = arith.addf %383, %385 : vector<2x8xf32>
    %cst_175 = arith.constant dense<0xFF800000> : vector<2xf32>
    %387 = vector.multi_reduction <maximumf>, %386, %cst_175 [1] : vector<2x8xf32> to vector<2xf32>
    %388 = vector.shape_cast %387 : vector<2xf32> to vector<2x1xf32>
    %389 = vector.broadcast %388 : vector<2x1xf32> to vector<2x8xf32>
    %390 = arith.subf %386, %389 : vector<2x8xf32>
    %391 = math.exp %390 : vector<2x8xf32>
    %cst_176 = arith.constant dense<0.000000e+00> : vector<2xf32>
    %392 = vector.multi_reduction <add>, %391, %cst_176 [1] : vector<2x8xf32> to vector<2xf32>
    %393 = vector.shape_cast %392 : vector<2xf32> to vector<2x1xf32>
    %394 = math.log %393 : vector<2x1xf32>
    %395 = arith.addf %394, %388 : vector<2x1xf32>
    %396 = vector.broadcast %395 : vector<2x1xf32> to vector<2x8xf32>
    %397 = arith.subf %386, %396 : vector<2x8xf32>
    %398 = math.exp %397 : vector<2x8xf32>
    %c0_177 = arith.constant 0 : index
    %c0_178 = arith.constant 0 : index
    %c0_179 = arith.constant 0 : index
    %399 = vector.load %arg5[%c0_177, %c0_178, %c0_179] : memref<1x2x8xf32, #tpu.memory_space<vmem>>, vector<1x2x8xf32>
    %400 = vector.shape_cast %399 : vector<1x2x8xf32> to vector<2x8xf32>
    %401 = arith.mulf %400, %397 : vector<2x8xf32>
    %cst_180 = arith.constant dense<0.000000e+00> : vector<2xf32>
    %402 = vector.multi_reduction <add>, %401, %cst_180 [1] : vector<2x8xf32> to vector<2xf32>
    %403 = vector.shape_cast %402 : vector<2xf32> to vector<2x1xf32>
    %cst_181 = arith.constant 0.000000e+00 : f32
    %404 = vector.broadcast %cst_181 : f32 to vector<2x1xf32>
    %405 = arith.subf %404, %403 : vector<2x1xf32>
    %406 = arith.mulf %400, %398 : vector<2x8xf32>
    %cst_182 = arith.constant dense<0.000000e+00> : vector<2xf32>
    %407 = vector.multi_reduction <add>, %406, %cst_182 [1] : vector<2x8xf32> to vector<2xf32>
    %408 = vector.shape_cast %407 : vector<2xf32> to vector<2x1xf32>
    %cst_183 = arith.constant 1.000000e+00 : f32
    %409 = vector.broadcast %cst_183 : f32 to vector<2x1xf32>
    %410 = arith.subf %409, %408 : vector<2x1xf32>
    %411 = arith.mulf %405, %410 : vector<2x1xf32>
    %412 = arith.mulf %411, %410 : vector<2x1xf32>
    %c0_184 = arith.constant 0 : index
    %c0_185 = arith.constant 0 : index
    %c0_186 = arith.constant 0 : index
    %413 = vector.load %arg29[%c0_184, %c0_185, %c0_186] : memref<1x2x1xf32, #tpu.memory_space<vmem>>, vector<1x2x1xf32>
    %414 = vector.shape_cast %413 : vector<1x2x1xf32> to vector<2x1xf32>
    %415 = vector.shape_cast %412 : vector<2x1xf32> to vector<1x2x1xf32>
    tpu.vector_store %arg29[%c0_184, %c0_185, %c0_186], %415 {strides = array<i32>} : memref<1x2x1xf32, #tpu.memory_space<vmem>>, vector<1x2x1xf32>,
    return
  }
  func.func @transform_0(%arg0: i32) -> (i32, i32, i32) {
    %c0_i32 = arith.constant 0 : i32
    %c0_i32_0 = arith.constant 0 : i32
    %c0_i32_1 = arith.constant 0 : i32
    return %arg0, %c0_i32, %c0_i32_0 : i32, i32, i32
  }
  func.func @transform_1(%arg0: i32) -> (i32, i32, i32) {
    %c0_i32 = arith.constant 0 : i32
    %c0_i32_0 = arith.constant 0 : i32
    %c0_i32_1 = arith.constant 0 : i32
    return %arg0, %c0_i32, %c0_i32_0 : i32, i32, i32
  }
  func.func @transform_2(%arg0: i32) -> (i32, i32, i32) {
    %c0_i32 = arith.constant 0 : i32
    %c0_i32_0 = arith.constant 0 : i32
    %c0_i32_1 = arith.constant 0 : i32
    return %arg0, %c0_i32, %c0_i32_0 : i32, i32, i32
  }
  func.func @transform_3(%arg0: i32) -> (i32, i32, i32) {
    %c0_i32 = arith.constant 0 : i32
    %c0_i32_0 = arith.constant 0 : i32
    %c0_i32_1 = arith.constant 0 : i32
    return %arg0, %c0_i32, %c0_i32_0 : i32, i32, i32
  }
  func.func @transform_4(%arg0: i32) -> (i32, i32, i32) {
    %c0_i32 = arith.constant 0 : i32
    %c0_i32_0 = arith.constant 0 : i32
    %c0_i32_1 = arith.constant 0 : i32
    return %arg0, %c0_i32, %c0_i32_0 : i32, i32, i32
  }
  func.func @transform_5(%arg0: i32) -> (i32, i32) {
    %c0_i32 = arith.constant 0 : i32
    %c0_i32_0 = arith.constant 0 : i32
    %c0_i32_1 = arith.constant 0 : i32
    return %c0_i32, %c0_i32_0 : i32, i32
  }
  func.func @transform_6(%arg0: i32) -> (i32, i32) {
    %c0_i32 = arith.constant 0 : i32
    %c0_i32_0 = arith.constant 0 : i32
    %c0_i32_1 = arith.constant 0 : i32
    return %c0_i32, %c0_i32_0 : i32, i32
  }
  func.func @transform_7(%arg0: i32) -> (i32, i32, i32) {
    %c0_i32 = arith.constant 0 : i32
    %c0_i32_0 = arith.constant 0 : i32
    %c0_i32_1 = arith.constant 0 : i32
    %c0_i32_2 = arith.constant 0 : i32
    return %c0_i32, %c0_i32_0, %c0_i32_1 : i32, i32, i32
  }
  func.func @transform_8(%arg0: i32) -> (i32, i32, i32) {
    %c0_i32 = arith.constant 0 : i32
    %c0_i32_0 = arith.constant 0 : i32
    %c0_i32_1 = arith.constant 0 : i32
    %c0_i32_2 = arith.constant 0 : i32
    return %c0_i32, %c0_i32_0, %c0_i32_1 : i32, i32, i32
  }
  func.func @transform_9(%arg0: i32) -> (i32, i32, i32) {
    %c0_i32 = arith.constant 0 : i32
    %c0_i32_0 = arith.constant 0 : i32
    %c0_i32_1 = arith.constant 0 : i32
    %c0_i32_2 = arith.constant 0 : i32
    return %c0_i32, %c0_i32_0, %c0_i32_1 : i32, i32, i32
  }
  func.func @transform_10(%arg0: i32) -> (i32, i32, i32) {
    %c0_i32 = arith.constant 0 : i32
    %c0_i32_0 = arith.constant 0 : i32
    %c0_i32_1 = arith.constant 0 : i32
    %c0_i32_2 = arith.constant 0 : i32
    return %c0_i32, %c0_i32_0, %c0_i32_1 : i32, i32, i32
  }
  func.func @transform_11(%arg0: i32) -> (i32, i32, i32) {
    %c0_i32 = arith.constant 0 : i32
    %c0_i32_0 = arith.constant 0 : i32
    %c0_i32_1 = arith.constant 0 : i32
    %c0_i32_2 = arith.constant 0 : i32
    return %c0_i32, %c0_i32_0, %c0_i32_1 : i32, i32, i32
  }
  func.func @transform_12(%arg0: i32) -> (i32, i32, i32) {
    %c0_i32 = arith.constant 0 : i32
    %c0_i32_0 = arith.constant 0 : i32
    %c0_i32_1 = arith.constant 0 : i32
    %c0_i32_2 = arith.constant 0 : i32
    return %c0_i32, %c0_i32_0, %c0_i32_1 : i32, i32, i32
  }
  func.func @transform_13(%arg0: i32) -> (i32, i32, i32) {
    %c0_i32 = arith.constant 0 : i32
    %c0_i32_0 = arith.constant 0 : i32
    %c0_i32_1 = arith.constant 0 : i32
    %c0_i32_2 = arith.constant 0 : i32
    return %c0_i32, %c0_i32_0, %c0_i32_1 : i32, i32, i32
  }
  func.func @transform_14(%arg0: i32) -> (i32, i32, i32) {
    %c0_i32 = arith.constant 0 : i32
    %c0_i32_0 = arith.constant 0 : i32
    %c0_i32_1 = arith.constant 0 : i32
    %c0_i32_2 = arith.constant 0 : i32
    return %c0_i32, %c0_i32_0, %c0_i32_1 : i32, i32, i32
  }
  func.func @transform_15(%arg0: i32) -> (i32, i32, i32) {
    %c0_i32 = arith.constant 0 : i32
    %c0_i32_0 = arith.constant 0 : i32
    %c0_i32_1 = arith.constant 0 : i32
    %c0_i32_2 = arith.constant 0 : i32
    return %c0_i32, %c0_i32_0, %c0_i32_1 : i32, i32, i32
  }
  func.func @transform_16(%arg0: i32) -> (i32, i32, i32) {
    %c0_i32 = arith.constant 0 : i32
    %c0_i32_0 = arith.constant 0 : i32
    %c0_i32_1 = arith.constant 0 : i32
    %c0_i32_2 = arith.constant 0 : i32
    return %c0_i32, %c0_i32_0, %c0_i32_1 : i32, i32, i32
  }
  func.func @transform_17(%arg0: i32) -> (i32, i32, i32) {
    %c0_i32 = arith.constant 0 : i32
    %c0_i32_0 = arith.constant 0 : i32
    %c0_i32_1 = arith.constant 0 : i32
    %c0_i32_2 = arith.constant 0 : i32
    return %c0_i32, %c0_i32_0, %c0_i32_1 : i32, i32, i32
  }
  func.func @transform_18(%arg0: i32) -> (i32, i32, i32) {
    %c0_i32 = arith.constant 0 : i32
    %c0_i32_0 = arith.constant 0 : i32
    %c0_i32_1 = arith.constant 0 : i32
    %c0_i32_2 = arith.constant 0 : i32
    return %c0_i32, %c0_i32_0, %c0_i32_1 : i32, i32, i32
  }
  func.func @transform_19(%arg0: i32) -> (i32, i32) {
    %c0_i32 = arith.constant 0 : i32
    %c0_i32_0 = arith.constant 0 : i32
    %c0_i32_1 = arith.constant 0 : i32
    return %c0_i32, %c0_i32_0 : i32, i32
  }
  func.func @transform_20(%arg0: i32) -> (i32, i32) {
    %c0_i32 = arith.constant 0 : i32
    %c0_i32_0 = arith.constant 0 : i32
    %c0_i32_1 = arith.constant 0 : i32
    return %c0_i32, %c0_i32_0 : i32, i32
  }
  func.func @transform_21(%arg0: i32) -> (i32, i32) {
    %c0_i32 = arith.constant 0 : i32
    %c0_i32_0 = arith.constant 0 : i32
    %c0_i32_1 = arith.constant 0 : i32
    return %c0_i32, %c0_i32_0 : i32, i32
  }
  func.func @transform_22(%arg0: i32) -> (i32, i32) {
    %c0_i32 = arith.constant 0 : i32
    %c0_i32_0 = arith.constant 0 : i32
    %c0_i32_1 = arith.constant 0 : i32
    return %c0_i32, %c0_i32_0 : i32, i32
  }
  func.func @transform_23(%arg0: i32) -> (i32, i32) {
    %c0_i32 = arith.constant 0 : i32
    %c0_i32_0 = arith.constant 0 : i32
    %c0_i32_1 = arith.constant 0 : i32
    return %c0_i32, %c0_i32_0 : i32, i32
  }
  func.func @transform_24(%arg0: i32) -> (i32, i32) {
    %c0_i32 = arith.constant 0 : i32
    %c0_i32_0 = arith.constant 0 : i32
    %c0_i32_1 = arith.constant 0 : i32
    return %c0_i32, %c0_i32_0 : i32, i32
  }
  func.func @transform_25(%arg0: i32) -> (i32, i32) {
    %c0_i32 = arith.constant 0 : i32
    %c0_i32_0 = arith.constant 0 : i32
    %c0_i32_1 = arith.constant 0 : i32
    return %c0_i32, %c0_i32_0 : i32, i32
  }
  func.func @transform_26(%arg0: i32) -> (i32, i32) {
    %c0_i32 = arith.constant 0 : i32
    %c0_i32_0 = arith.constant 0 : i32
    %c0_i32_1 = arith.constant 0 : i32
    return %c0_i32, %c0_i32_0 : i32, i32
  }
  func.func @transform_27(%arg0: i32) -> (i32, i32, i32) {
    %c0_i32 = arith.constant 0 : i32
    %c0_i32_0 = arith.constant 0 : i32
    %c0_i32_1 = arith.constant 0 : i32
    return %arg0, %c0_i32, %c0_i32_0 : i32, i32, i32
  }
  func.func @transform_28(%arg0: i32) -> (i32, i32, i32) {
    %c0_i32 = arith.constant 0 : i32
    %c0_i32_0 = arith.constant 0 : i32
    %c0_i32_1 = arith.constant 0 : i32
    return %arg0, %c0_i32, %c0_i32_0 : i32, i32, i32
  }
}

</mosaic_0001>

<bundles_post_ra>
// kernel: custom-call.18
= control target key start
LH: loop header
LB: loop body
LE: loop exit
PB: predicated region body
PF: predicated region fallthrough
CT: control target
= control target key end

     0   :  { %s6_s0 = inlined_call_operand.vmem [shape: s32[15,2,3], index: 0, kind: output, shape index: {}]  }

// kernel: forward_train.1
= control target key start
LH: loop header
LB: loop body
LE: loop exit
PB: predicated region body
PF: predicated region fallthrough
CT: control target
= control target key end

     0   :  { %s3809_s0 = inlined_call_operand.vmem [shape: f32[2,16,32], index: 0, kind: input, shape index: {}]   ;;  %s3810_s1 = inlined_call_operand.vmem [shape: f32[2,1,16], index: 1, kind: input, shape index: {}]   ;;  %s3811_s2 = inlined_call_operand.vmem [shape: s32[2,2,1], index: 2, kind: input, shape index: {}]   ;;  %s3812_s3 = inlined_call_operand.vmem [shape: s32[2,2,1], index: 3, kind: input, shape index: {}]   ;;  %s3813_s4 = inlined_call_operand.vmem [shape: f32[2,2,8], index: 4, kind: input, shape index: {}]   ;;  %s3814_s5 = inlined_call_operand.vmem [shape: f32[1,32], index: 5, kind: input, shape index: {}]   ;;  %s3815_s6 = inlined_call_operand.vmem [shape: f32[1,32], index: 6, kind: input, shape index: {}]   ;;  %s3816_s7 = inlined_call_operand.vmem [shape: f32[2,32,96], index: 7, kind: input, shape index: {}]   ;;  %s3817_s8 = inlined_call_operand.vmem [shape: f32[2,1,96], index: 8, kind: input, shape index: {}]   ;;  %s3818_s9 = inlined_call_operand.vmem [shape: f32[2,32,32], index: 9, kind: input, shape index: {}]   ;;  %s3819_s10 = inlined_call_operand.vmem [shape: f32[2,1,32], index: 10, kind: input, shape index: {}]   ;;  %s3820_s11 = inlined_call_operand.vmem [shape: f32[2,1,32], index: 11, kind: input, shape index: {}]   ;;  %s3821_s12 = inlined_call_operand.vmem [shape: f32[2,1,32], index: 12, kind: input, shape index: {}]   ;;  %s3822_s13 = inlined_call_operand.vmem [shape: f32[2,32,64], index: 13, kind: input, shape index: {}]   ;;  %s3823_s14 = inlined_call_operand.vmem [shape: f32[2,1,64], index: 14, kind: input, shape index: {}]   ;;  %s3824_s15 = inlined_call_operand.vmem [shape: f32[2,64,32], index: 15, kind: input, shape index: {}]   ;;  %s3825_s16 = inlined_call_operand.vmem [shape: f32[2,1,32], index: 16, kind: input, shape index: {}]   ;;  %s3826_s17 = inlined_call_operand.vmem [shape: f32[2,1,32], index: 17, kind: input, shape index: {}]   ;;  %s3827_s18 = inlined_call_operand.vmem [shape: f32[2,1,32], index: 18, kind: input, shape index: {}]   ;;  %s3828_s19 = inlined_call_operand.vmem [shape: f32[32,3], index: 19, kind: input, shape index: {}]   ;;  %s3829_s20 = inlined_call_operand.vmem [shape: f32[1,3], index: 20, kind: input, shape index: {}]   ;;  %s3830_s21 = inlined_call_operand.vmem [shape: f32[32,64], index: 21, kind: input, shape index: {}]   ;;  %s3831_s22 = inlined_call_operand.vmem [shape: f32[1,64], index: 22, kind: input, shape index: {}]   ;;  %s3832_s23 = inlined_call_operand.vmem [shape: f32[1,64], index: 23, kind: input, shape index: {}]   ;;  %s3833_s24 = inlined_call_operand.<no memory space> [shape: f32[1,1], index: 24, kind: input, shape index: {}]   ;;  %s3834_s25 = inlined_call_operand.vmem [shape: f32[32,8], index: 25, kind: input, shape index: {}]   ;;  %s3835_s26 = inlined_call_operand.vmem [shape: f32[1,8], index: 26, kind: input, shape index: {}]   ;;  %s3836_s27 = inlined_call_operand.vmem [shape: f32[2,16,3], index: 27, kind: output, shape index: {0}]   ;;  %s3837_s28 = inlined_call_operand.vmem [shape: f32[2,2,1], index: 28, kind: output, shape index: {1}]  }
   0x1   :  { %3856 = sst [smem:[#allocation4_spill]] %s3809_s0  ;;  %v34_v0 = vstv %s3833_s24 }
   0x2   :  { %3857 = sst [smem:[#allocation5_spill]] %s3810_s1  ;;  %35 = vst [vmem:[#allocation2] sm:$0x1] %v34_v0 }
   0x3   :  { %3858 = sst [smem:[#allocation6_spill]] %s3811_s2 }
   0x4   :  { %3859 = sst [smem:[#allocation7_spill]] %s3812_s3 }
   0x5   :  { %3860 = sst [smem:[#allocation8_spill]] %s3813_s4 }
   0x6   :  { %3861 = sst [smem:[#allocation9_spill]] %s3814_s5 }
   0x7   :  { %3862 = sst [smem:[#allocation10_spill]] %s3815_s6 }
   0x8   :  { %3863 = sst [smem:[#allocation11_spill]] %s3816_s7 }
   0x9   :  { %3864 = sst [smem:[#allocation12_spill]] %s3817_s8 }
   0xa   :  { %3865 = sst [smem:[#allocation13_spill]] %s3818_s9  ;;  %s3326_s9 = smov 0  }
   0xb   :  { %3866 = sst [smem:[#allocation14_spill]] %s3819_s10 }
   0xc   :  { %3867 = sst [smem:[#allocation15_spill]] %s3820_s11 }
   0xd   :  { %3868 = sst [smem:[#allocation16_spill]] %s3821_s12 }
   0xe   :  { %3869 = sst [smem:[#allocation17_spill]] %s3822_s13 }
   0xf LB: > { %3870 = sst [smem:[#allocation3_spill]] %s3168_s9  ;;  %s2757_s30 = sadd.s32 4294967295, %s3168_s9   ;;  %s3168_s9 = sphi %s3326_s9, %s41_s9  }
  0x10   : > { %p2761_p0 = scmp.ge.s32.totalorder %s3168_s9, 1  ;;  %p802_p1 = scmp.lt.s32.totalorder %s3168_s9, 3 }
  0x12   : > { %p803_p2 = pnand %p2761_p0, %p802_p1 }
  0x13   : > { %p895_p3 = scmp.lt.s32.totalorder (!%p803_p2), %s2757_s30, 1  ;;  %vm929_vm0 = vcmask (!%p803_p2), 261120   ;;  %s3871_s10 = sld [smem:[#allocation4_spill]] (!%p803_p2)  ;;  %v3170_v18 = vmov (!%p803_p2), 0.0   ;;  %vm3171_vm1 = vmmov (!%p803_p2), 0   ;;  %vm1041_vm2 = vcmask (!%p803_p2), 130048  }
  0x14   : > { %806 = sbr.rel (%p803_p2) target bundleno = 7939 (0x1f03), region = 128  ;;  %s3872_s2 = sld [smem:[#allocation11_spill]] (!%p803_p2)  ;;  %2906 = vmatprep.subr.bf16.mxu0 (!%p803_p2), %v3170_v18  ;;  %2914 = vmatprep.subr.bf16.mxu1 (!%p803_p2), %v3170_v18  ;;  %vm1538_vm3 = vcmask (!%p803_p2), 523264   ;;  %vm2346_vm4 = vcmask (!%p803_p2), 23552   ;;  %vm2482_vm7 = vcmask (!%p803_p2), 123904   ;;  %vm2595_vm9 = vcmask (!%p803_p2), 58368  }
  0x15   : > { %2910 = vmatprep.mubr.msk.bf16.mxu0 (!%p803_p2), %vm3171_vm1, %v3170_v18  ;;  %2916 = vmatprep.mubr.msk.bf16.mxu1 (!%p803_p2), %vm3171_vm1, %v3170_v18  ;;  %s3874_s29 = sld [smem:[#allocation10_spill]] (!%p803_p2)  ;;  %s3875_s1 = sld [smem:[#allocation12_spill]] (!%p803_p2)  ;;  %vm2624_vm10 = vcmask (!%p803_p2), 1024  }
  0x16   : > { %s3849_s4 = smov (!%p803_p2), 96   ;;  %s3848_s8 = smov (!%p803_p2), 80  }
  0x17   : > { %s3846_s5 = smov (!%p803_p2), 112   ;;  %s3847_s11 = smov (!%p803_p2), 64  }
  0x18   : > { %s3877_s12 = sld [smem:[#allocation13_spill]] (!%p803_p2)  ;;  %s3879_s13 = sld [smem:[#allocation17_spill]] (!%p803_p2) }
  0x19   : > { %s3881_s3 = sld [smem:[#allocation16_spill]] (!%p803_p2)  ;;  %s3882_s9 = smov (!%p803_p2), 96  }
  0x1a   : > { %v974_v15 = vld [vmem:[%s3872_s2] sm:$0xff] (!%p803_p2)  ;;  %v975_v16 = vld [vmem:[%s3872_s2 + $0x8] sm:$0xff] (!%p803_p2)  ;;  %v976_v19 = vld [vmem:[%s3872_s2 + $0x10] sm:$0xff] (!%p803_p2)  ;;  %s3883_s7 = smov (!%p803_p2), 80   ;;  %s3884_s6 = smov (!%p803_p2), 64  }
  0x1b   : > { %s3893_s30 = smov (!%p895_p3, %s2757_s30), 1  ;;  %v979_v17 = vpack.c.bf16 %v975_v16, %v974_v15  ;;  %v977_v20 = vld [vmem:[%s3872_s2 + $0x18] sm:$0xff]  ;;  %v2771_v34 = vld [vmem:[%s3874_s29] ss:$0 sm:$0xff]  ;;  %s3878_s29 = sld [smem:[#allocation14_spill]] }
  0x1c   : > { %s3844_s24 = sshll.u32 %s3893_s30, 4  ;;  %v980_v21 = vpack.c.bf16 %v977_v20, %v976_v19  ;;  %v2772_v39 = vld [vmem:[%s3875_s1] ss:$0 sm:$0xff] }
  0x1d   : > { %s899_s0 = scalar_lea.vmem %s3871_s10, %s3844_s24  ;;  %2907 = vmatpush3.bf16.msra.mxu0 %v979_v17  ;;  %s3873_s10 = sld [smem:[#allocation9_spill]] }
  0x1e   : > { %v925_v1 = vld [vmem:[%s899_s0] sm:$0xff]  ;;  %v926_v2 = vld [vmem:[%s899_s0 + $0x8] sm:$0xff]  ;;  %2908 = vmatprep.subr.bf16.mxu0 %v3170_v18  ;;  %s3747_s24 = sshll.u32 %s3893_s30, 1 }
  0x1f   : > { %v930_v3 = vsel %vm929_vm0, %v925_v1, 0.0  ;;  %v933_v4 = vsel %vm929_vm0, %v926_v2, 0.0  ;;  %v1033_v17 = vld [vmem:[%s3877_s12] sm:$0xff]  ;;  %v1034_v19 = vld [vmem:[%s3877_s12 + $0x8] sm:$0xff] }
  0x20   : > { %931 = vadd.xlane.f32.xlu0 %v930_v3  ;;  %v1170_v20 = vpack.c.bf16 %v1034_v19, %v1033_v17 }
  0x21   : > { %2909 = vmatpush3.bf16.msra.mxu0 %v980_v21 }
  0x22   : > { %2920 = vmatprep.subr.bf16.mxu0 %v3170_v18 }
  0x23   : > { %v2770_v30 = vld [vmem:[%s3873_s10] ss:$0 sm:$0xff]  ;;  %s3876_s10 = sld [smem:[#allocation5_spill]] }
  0x24   : > { %934 = vadd.xlane.f32.xlu0 %v933_v4 }
  0x29   : > { %s902_s0 = scalar_lea.vmem %s3876_s10, %s3893_s30  ;;  %s3845_s10 = smov 48  }
  0x2a   : > { %v3402_v49 = vld [vmem:[%s902_s0] ss:$0 sm:$0xff]  ;;  %s3885_s0 = smov 112  }
  0xad   : > { %v932_v5 = vpop.xlane.xlu0 %931 }
  0xae   : > { %v937_v6 = vmul.f32 0.03125, %v932_v5 }
  0xb0   : > { %v939_v7 = vsub.f32 %v925_v1, %v937_v6 }
  0xb1   : > { %v935_v8 = vpop.xlane.xlu0 %934 }
  0xb2   : > { %v938_v9 = vmul.f32 0.03125, %v935_v8  ;;  %v941_v10 = vmul.f32 %v939_v7, %v939_v7 }
  0xb4   : > { %v940_v11 = vsub.f32 %v926_v2, %v938_v9  ;;  %v943_v12 = vsel %vm929_vm0, %v941_v10, 0.0 }
  0xb5   : > { %944 = vadd.xlane.f32.xlu1 %v943_v12 }
  0xb6   : > { %v942_v13 = vmul.f32 %v940_v11, %v940_v11 }
  0xb8   : > { %v946_v14 = vsel %vm929_vm0, %v942_v13, 0.0 }
  0xb9   : > { %947 = vadd.xlane.f32.xlu1 %v946_v14 }
 0x142   : > { %v945_v22 = vpop.xlane.xlu1 %944 }
 0x143   : > { %v949_v23 = vmul.f32 0.03125, %v945_v22 }
 0x145   : > { %v951_v24 = vadd.f32 1e-12, %v949_v23 }
 0x146   : > { %v948_v25 = vpop.xlane.xlu1 %947 }
 0x147   : > { %3088 = vrsqrt.f32 %v951_v24  ;;  %v950_v26 = vmul.f32 0.03125, %v948_v25 }
 0x149   : > { %v952_v27 = vadd.f32 1e-12, %v950_v26 }
 0x14b   : > { %3090 = vrsqrt.f32 %v952_v27 }
 0x151   : > { %v3089_v28 = vpop.eup %3088 }
 0x152   : > { %v955_v29 = vmul.f32 %v3089_v28, %v939_v7 }
 0x154   : > { %v963_v33 = vmul.f32 %v2770_v30, %v955_v29 }
 0x155   : > { %v3091_v31 = vpop.eup %3090 }
 0x156   : > { %v956_v32 = vmul.f32 %v3091_v31, %v940_v11  ;;  %v3372_v36 = vadd.f32 %v2771_v34, %v963_v33 }
 0x158   : > { %v964_v35 = vmul.f32 %v2770_v30, %v956_v32 }
 0x15a   : > { %v3374_v37 = vadd.f32 %v2771_v34, %v964_v35 }
 0x15c   : > { %v978_v38 = vpack.c.bf16 %v3374_v37, %v3372_v36 }
 0x15e   : > { %2911 = vmatmul.mubr.msk.bf16.vlgmr.msra.gmra.mrb[0].mxu0 %vm929_vm0, %v978_v38 }
 0x15f   : > { %2922 = vmatprep.mubr.msk.bf16.mxu0 %vm3171_vm1, %v3170_v18 }
 0x231   : > { %v1025_v40 = vpop.f32.mrb[0].mxu0 }
 0x232   : > { %v2912_v41 = vpop.f32.mrb[1].mxu0  ;;  %v1026_v43 = vadd.f32 %v2772_v39, %v1025_v40 }
 0x233   : > { %v1028_v42 = vpop.f32.mrb[2].mxu0 }
 0x234   : > { %v1029_v44 = vadd.f32 %v2772_v39, %v1028_v42  ;;  %v2913_v45 = vpop.f32.mrb[3].mxu0 }
 0x236   : > { %v3384_v46 = vpack.c.bf16 %v1029_v44, %v1026_v43 }
 0x238   : > { %1039 = vrot.lane.b32.xlu0 %v3384_v46, %s3849_s4  ;;  %s3887_s4 = sld [smem:[#allocation7_spill]] }
 0x23c   : > { %1225 = vrot.lane.b32.xlu0 %v3384_v46, %s3848_s8  ;;  %s3886_s8 = smov 48  }
 0x240   : > { %1223 = vrot.lane.b32.xlu0 %v3384_v46, %s3846_s5  ;;  %s3880_s5 = sld [smem:[#allocation15_spill]] }
 0x2aa   : > { %v1040_v47 = vpop.permute.xlu0 %1039 }
 0x2ab   : > { %v1046_v48 = vsel %vm1041_vm2, %v1040_v47, 0 }
 0x2ac   : > { %2915 = vmatpush3.bf16.xpose.msra.mxu1 %v1046_v48 }
 0x2ad   : > { %2926 = vmatprep.subr.bf16.mxu1 %v3170_v18 }
 0x2ae   : > { %v1226_v13 = vpop.permute.xlu0 %1225 }
 0x2af   : > { %v1231_v15 = vsel %vm1041_vm2, %v1226_v13, 0 }
 0x2b2   : > { %v1224_v16 = vpop.permute.xlu0 %1223 }
 0x2b3   : > { %2917 = vmatmul.mubr.msk.bf16.vlgmr.msra.gmra.mrb[0].mxu1 %vm1041_vm2, %v3384_v46 }
 0x2b4   : > { %2928 = vmatprep.mubr.msk.bf16.mxu1 %vm3171_vm1, %v3170_v18  ;;  %2927 = vmatpush3.bf16.msra.mxu1 %v1170_v20 }
 0x2b5   : > { %2938 = vmatprep.subr.bf16.mxu1 %v3170_v18 }
 0x386   : > { %v1082_v50 = vpop.f32.mrb[0].mxu1 }
 0x387   : > { %v1089_v51 = vmul.f32 0.25, %v1082_v50  ;;  %v2918_v52 = vpop.f32.mrb[1].mxu1  ;;  %v1035_v50 = vld [vmem:[%s3877_s12 + $0x10] sm:$0xff] }
 0x388   : > { %v1085_v53 = vpop.f32.mrb[2].mxu1 }
 0x389   : > { %v1090_v54 = vmul.f32 0.25, %v1085_v53  ;;  %v2919_v55 = vpop.f32.mrb[3].mxu1  ;;  %v1097_v56 = vadd.f32 %v3402_v49, %v1089_v51  ;;  %v1036_v51 = vld [vmem:[%s3877_s12 + $0x18] sm:$0xff] }
 0x38a   : > { %v1349_v52 = vpack.c.bf16 %v1036_v51, %v1035_v50 }
 0x38b   : > { %v1099_v57 = vsel %vm1041_vm2, %v1097_v56, -inf  ;;  %v1098_v58 = vadd.f32 %v3402_v49, %v1090_v54 }
 0x38c   : > { %1100 = vmax.xlane.f32.xlu1 %v1099_v57 }
 0x38d   : > { %v1102_v59 = vsel %vm1041_vm2, %v1098_v58, -inf }
 0x390   : > { %1103 = vmax.xlane.f32.xlu1 %v1102_v59 }
 0x419   : > { %v1101_v60 = vpop.xlane.xlu1 %1100 }
 0x41a   : > { %v1105_v61 = vsub.f32 %v1097_v56, %v1101_v60 }
 0x41c   : > { %v1107_v62 = vmul.f32 1.442695, %v1105_v61 }
 0x41d   : > { %v1104_v63 = vpop.xlane.xlu1 %1103 }
 0x41e   : > { %3092 = vpow2.f32 %v1107_v62  ;;  %v1106_v0 = vsub.f32 %v1098_v58, %v1104_v63 }
 0x420   : > { %v1109_v1 = vmul.f32 1.442695, %v1106_v0 }
 0x422   : > { %3094 = vpow2.f32 %v1109_v1 }
 0x428   : > { %v3093_v2 = vpop.eup %3092 }
 0x429   : > { %v1111_v3 = vsel %vm1041_vm2, %v3093_v2, 0.0 }
 0x42a   : > { %1112 = vadd.xlane.f32.xlu1 %v1111_v3 }
 0x42c   : > { %v3095_v4 = vpop.eup %3094 }
 0x42d   : > { %v1114_v5 = vsel %vm1041_vm2, %v3095_v4, 0.0 }
 0x42e   : > { %1115 = vadd.xlane.f32.xlu1 %v1114_v5  ;;  %v2778_v5 = vld [vmem:[%s3878_s29] ss:$0 sm:$0xff] }
 0x43f   : > { %1122 = vrot.lane.b32.xlu1 %v3384_v46, %s3847_s11  ;;  %s3890_s11 = sld [smem:[#allocation8_spill]] }
 0x4b7   : > { %v1113_v6 = vpop.xlane.xlu1 %1112 }
 0x4b8   : > { %3096 = vrcp.f32 %v1113_v6 }
 0x4bb   : > { %v1116_v7 = vpop.xlane.xlu1 %1115 }
 0x4bc   : > { %3098 = vrcp.f32 %v1116_v7 }
 0x4bf   : > { %v1123_v8 = vpop.permute.xlu1 %1122 }
 0x4c0   : > { %2921 = vmatpush3.bf16.msra.mxu0 %v1123_v8 }
 0x4c1   : > { %2932 = vmatprep.subr.bf16.mxu0 %v3170_v18 }
 0x4c2   : > { %v3097_v9 = vpop.eup %3096 }
 0x4c3   : > { %v1119_v11 = vmul.f32 %v3097_v9, %v3093_v2 }
 0x4c6   : > { %v3099_v10 = vpop.eup %3098 }
 0x4c7   : > { %v1120_v12 = vmul.f32 %v3099_v10, %v3095_v4 }
 0x4c9   : > { %v1121_v14 = vpack.c.bf16 %v1120_v12, %v1119_v11 }
 0x4cb   : > { %2923 = vmatmul.mubr.msk.bf16.vlgmr.msra.gmra.mrb[4].mxu0 %vm1041_vm2, %v1121_v14 }
 0x4cc   : > { %2933 = vmatpush3.bf16.xpose.msra.mxu0 %v1231_v15  ;;  %2934 = vmatprep.mubr.msk.bf16.mxu0 %vm3171_vm1, %v3170_v18 }
 0x4cd   : > { %2944 = vmatprep.subr.bf16.mxu0 %v3170_v18 }
 0x4d3   : > { %2935 = vmatmul.mubr.msk.bf16.vlgmr.msra.gmra.mrb[8].mxu0 %vm1041_vm2, %v1224_v16 }
 0x4d4   : > { %2946 = vmatprep.mubr.msk.bf16.mxu0 %vm3171_vm1, %v3170_v18  ;;  %2945 = vmatpush3.bf16.msra.mxu0 %v1349_v52 }
 0x4d5   : > { %2958 = vmatprep.subr.bf16.mxu0 %v3170_v18 }
 0x59e   : > { %v1162_v21 = vpop.f32.mrb[4].mxu0 }
 0x59f   : > { %v2924_v22 = vpop.f32.mrb[5].mxu0 }
 0x5a0   : > { %v1165_v23 = vpop.f32.mrb[6].mxu0 }
 0x5a1   : > { %v1169_v24 = vpack.c.bf16 %v1165_v23, %v1162_v21  ;;  %v2925_v25 = vpop.f32.mrb[7].mxu0 }
 0x5a3   : > { %2929 = vmatmul.mubr.msk.bf16.vlgmr.msra.gmra.mrb[4].mxu1 %vm1041_vm2, %v1169_v24 }
 0x5a4   : > { %2940 = vmatprep.mubr.msk.bf16.mxu1 %vm3171_vm1, %v3170_v18 }
 0x5a6   : > { %v1267_v26 = vpop.f32.mrb[8].mxu0 }
 0x5a7   : > { %v1274_v27 = vmul.f32 0.25, %v1267_v26  ;;  %v2936_v28 = vpop.f32.mrb[9].mxu0 }
 0x5a8   : > { %v1270_v29 = vpop.f32.mrb[10].mxu0  ;;  %v1443_v28 = vld [vmem:[%s3879_s13 + $0x8] sm:$0xff] }
 0x5a9   : > { %v1275_v30 = vmul.f32 0.25, %v1270_v29  ;;  %v2937_v31 = vpop.f32.mrb[11].mxu0  ;;  %v1276_v32 = vadd.f32 %v3402_v49, %v1274_v27 }
 0x5aa   : > { %v1445_v31 = vld [vmem:[%s3879_s13 + $0x18] sm:$0xff] }
 0x5ab   : > { %v1278_v33 = vsel %vm1041_vm2, %v1276_v32, -inf  ;;  %v1277_v34 = vadd.f32 %v3402_v49, %v1275_v30  ;;  %v1444_v30 = vld [vmem:[%s3879_s13 + $0x10] sm:$0xff] }
 0x5ac   : > { %1279 = vmax.xlane.f32.xlu0 %v1278_v33 }
 0x5ad   : > { %v1281_v35 = vsel %vm1041_vm2, %v1277_v34, -inf }
 0x5ae   : > { %1282 = vmax.xlane.f32.xlu1 %v1281_v35 }
 0x639   : > { %v1280_v38 = vpop.xlane.xlu0 %1279 }
 0x63a   : > { %v1284_v39 = vsub.f32 %v1276_v32, %v1280_v38  ;;  %v1448_v32 = vpack.c.bf16 %v1445_v31, %v1444_v30 }
 0x63b   : > { %v1283_v40 = vpop.xlane.xlu1 %1282 }
 0x63c   : > { %v1286_v41 = vmul.f32 1.442695, %v1284_v39  ;;  %v1285_v42 = vsub.f32 %v1277_v34, %v1283_v40 }
 0x63e   : > { %3100 = vpow2.f32 %v1286_v41  ;;  %v1288_v43 = vmul.f32 1.442695, %v1285_v42 }
 0x640   : > { %3102 = vpow2.f32 %v1288_v43  ;;  %v2782_v43 = vld [vmem:[%s3880_s5] ss:$0 sm:$0xff] }
 0x648   : > { %v3101_v44 = vpop.eup %3100 }
 0x649   : > { %v1290_v45 = vsel %vm1041_vm2, %v3101_v44, 0.0 }
 0x64a   : > { %v3103_v47 = vpop.eup %3102  ;;  %1291 = vadd.xlane.f32.xlu0 %v1290_v45 }
 0x64b   : > { %v1293_v48 = vsel %vm1041_vm2, %v3103_v47, 0.0 }
 0x64e   : > { %1294 = vadd.xlane.f32.xlu0 %v1293_v48  ;;  %v2783_v48 = vld [vmem:[%s3881_s3] ss:$0 sm:$0xff] }
 0x664   : > { %1301 = vrot.lane.b32.xlu0 %v3384_v46, %s3845_s10 }
 0x676   : > { %v1208_v53 = vpop.f32.mrb[4].mxu1 }
 0x677   : > { %v2930_v54 = vpop.f32.mrb[5].mxu1  ;;  %v1221_v6 = vadd.f32 %v2778_v5, %v1208_v53 }
 0x678   : > { %v1211_v55 = vpop.f32.mrb[6].mxu1  ;;  %v1518_v54 = vld [vmem:[%s3824_s15] sm:$0xff] }
 0x679   : > { %v2931_v56 = vpop.f32.mrb[7].mxu1  ;;  %v1222_v8 = vadd.f32 %v2778_v5, %v1211_v55  ;;  %v1519_v55 = vld [vmem:[%s3824_s15 + $0x8] sm:$0xff] }
 0x67a   : > { %v1520_v56 = vld [vmem:[%s3824_s15 + $0x10] sm:$0xff] }
 0x6d7   : > { %v1292_v57 = vpop.xlane.xlu0 %1291 }
 0x6d8   : > { %3104 = vrcp.f32 %v1292_v57  ;;  %v1527_v57 = vpack.c.bf16 %v1519_v55, %v1518_v54  ;;  %v2792_v54 = vld [vmem:[%s3872_s2 + $0x30] sm:$0xff]  ;;  %v2793_v55 = vld [vmem:[%s3872_s2 + $0x38] sm:$0xff] }
 0x6db   : > { %v1295_v58 = vpop.xlane.xlu0 %1294 }
 0x6dc   : > { %3106 = vrcp.f32 %v1295_v58  ;;  %v1521_v58 = vld [vmem:[%s3824_s15 + $0x18] sm:$0xff] }
 0x6df   : > { %v1302_v46 = vpop.permute.xlu0 %1301 }
 0x6e0   : > { %2939 = vmatpush3.bf16.msra.mxu1 %v1302_v46  ;;  %v1528_v46 = vpack.c.bf16 %v1521_v58, %v1520_v56  ;;  %v1636_v56 = vpack.c.bf16 %v2793_v55, %v2792_v54  ;;  %v2799_v54 = vld [vmem:[%s3877_s12 + $0x28] sm:$0xff] }
 0x6e1   : > { %2950 = vmatprep.subr.bf16.mxu1 %v3170_v18 }
 0x6e2   : > { %v3105_v59 = vpop.eup %3104 }
 0x6e3   : > { %v1298_v61 = vmul.f32 %v3105_v59, %v3101_v44  ;;  %v1522_v59 = vld [vmem:[%s3824_s15 + $0x20] sm:$0xff] }
 0x6e6   : > { %v3107_v60 = vpop.eup %3106 }
 0x6e7   : > { %v1299_v62 = vmul.f32 %v3107_v60, %v3103_v47  ;;  %v1523_v60 = vld [vmem:[%s3824_s15 + $0x28] sm:$0xff] }
 0x6e9   : > { %v1300_v63 = vpack.c.bf16 %v1299_v62, %v1298_v61  ;;  %v1529_v61 = vpack.c.bf16 %v1523_v60, %v1522_v59  ;;  %v1524_v62 = vld [vmem:[%s3824_s15 + $0x30] sm:$0xff] }
 0x6eb   : > { %2941 = vmatmul.mubr.msk.bf16.vlgmr.msra.gmra.mrb[8].mxu1 %vm1041_vm2, %v1300_v63  ;;  %v1525_v63 = vld [vmem:[%s3824_s15 + $0x38] sm:$0xff] }
 0x6ec   : > { %2954 = vmatprep.mubr.msk.bf16.mxu1 %vm3171_vm1, %v3170_v18 }
 0x7be   : > { %v1341_v0 = vpop.f32.mrb[8].mxu1 }
 0x7bf   : > { %v2942_v1 = vpop.f32.mrb[9].mxu1 }
 0x7c0   : > { %v1344_v2 = vpop.f32.mrb[10].mxu1  ;;  %v2784_v1 = vld [vmem:[%s3823_s14] ss:$0 sm:$0xff] }
 0x7c1   : > { %v1348_v3 = vpack.c.bf16 %v1344_v2, %v1341_v0  ;;  %v2943_v4 = vpop.f32.mrb[11].mxu1  ;;  %v1530_v0 = vpack.c.bf16 %v1525_v63, %v1524_v62 }
 0x7c3   : > { %2947 = vmatmul.mubr.msk.bf16.vlgmr.msra.gmra.mrb[12].mxu0 %vm1041_vm2, %v1348_v3 }
 0x7c4   : > { %2966 = vmatprep.mubr.msk.bf16.mxu0 %vm3171_vm1, %v3170_v18  ;;  %2959 = vmatpush3.bf16.msra.mxu0 %v1527_v57 }
 0x7c5   : > { %2960 = vmatprep.subr.bf16.mxu0 %v3170_v18 }
 0x7c8   : > { %2961 = vmatpush3.bf16.msra.mxu0 %v1528_v46 }
 0x7c9   : > { %2962 = vmatprep.subr.bf16.mxu0 %v3170_v18 }
 0x7cc   : > { %2963 = vmatpush3.bf16.msra.mxu0 %v1529_v61 }
 0x7cd   : > { %2964 = vmatprep.subr.bf16.mxu0 %v3170_v18 }
 0x7d0   : > { %2965 = vmatpush3.bf16.msra.mxu0 %v1530_v0  ;;  %v2788_v0 = vld [vmem:[%s3826_s17] ss:$0 sm:$0xff] }
 0x7d1   : > { %2984 = vmatprep.subr.bf16.mxu0 %v3170_v18 }
 0x896   : > { %v1387_v7 = vpop.f32.mrb[12].mxu0 }
 0x897   : > { %v1394_v9 = vadd.f32 %v1387_v7, %v1221_v6  ;;  %v2948_v10 = vpop.f32.mrb[13].mxu0 }
 0x898   : > { %v1390_v11 = vpop.f32.mrb[14].mxu0 }
 0x899   : > { %v1395_v12 = vadd.f32 %v1390_v11, %v1222_v8  ;;  %v2949_v13 = vpop.f32.mrb[15].mxu0  ;;  %v1396_v14 = vadd.f32 %v1394_v9, %v3372_v36 }
 0x89b   : > { %v1400_v15 = vsel %vm929_vm0, %v1396_v14, 0.0  ;;  %v1397_v16 = vadd.f32 %v1395_v12, %v3374_v37  ;;  %v1442_v37 = vld [vmem:[%s3879_s13] sm:$0xff] }
 0x89c   : > { %1401 = vadd.xlane.f32.xlu1 %v1400_v15  ;;  %v1447_v29 = vpack.c.bf16 %v1443_v28, %v1442_v37 }
 0x89d   : > { %v1403_v17 = vsel %vm929_vm0, %v1397_v16, 0.0 }
 0x89e   : > { %2951 = vmatpush3.bf16.msra.mxu1 %v1447_v29 }
 0x89f   : > { %2952 = vmatprep.subr.bf16.mxu1 %v3170_v18 }
 0x8a0   : > { %1404 = vadd.xlane.f32.xlu1 %v1403_v17 }
 0x8a2   : > { %2953 = vmatpush3.bf16.msra.mxu1 %v1448_v32 }
 0x8a3   : > { %2970 = vmatprep.subr.bf16.mxu1 %v3170_v18 }
 0x929   : > { %v1402_v19 = vpop.xlane.xlu1 %1401 }
 0x92a   : > { %v1406_v20 = vmul.f32 0.03125, %v1402_v19 }
 0x92c   : > { %v1408_v21 = vsub.f32 %v1396_v14, %v1406_v20 }
 0x92d   : > { %v1405_v22 = vpop.xlane.xlu1 %1404 }
 0x92e   : > { %v1407_v23 = vmul.f32 0.03125, %v1405_v22  ;;  %v1410_v24 = vmul.f32 %v1408_v21, %v1408_v21 }
 0x930   : > { %v1409_v25 = vsub.f32 %v1397_v16, %v1407_v23  ;;  %v1412_v26 = vsel %vm929_vm0, %v1410_v24, 0.0 }
 0x931   : > { %1413 = vadd.xlane.f32.xlu1 %v1412_v26 }
 0x932   : > { %v1411_v27 = vmul.f32 %v1409_v25, %v1409_v25 }
 0x934   : > { %v1415_v36 = vsel %vm929_vm0, %v1411_v27, 0.0 }
 0x935   : > { %1416 = vadd.xlane.f32.xlu1 %v1415_v36  ;;  %v2786_v36 = vld [vmem:[%s3825_s16] ss:$0 sm:$0xff] }
 0x9be   : > { %v1414_v33 = vpop.xlane.xlu1 %1413 }
 0x9bf   : > { %v1418_v34 = vmul.f32 0.03125, %v1414_v33 }
 0x9c1   : > { %v1420_v35 = vadd.f32 1e-12, %v1418_v34 }
 0x9c2   : > { %v1417_v38 = vpop.xlane.xlu1 %1416 }
 0x9c3   : > { %3108 = vrsqrt.f32 %v1420_v35  ;;  %v1419_v39 = vmul.f32 0.03125, %v1417_v38 }
 0x9c5   : > { %v1421_v40 = vadd.f32 1e-12, %v1419_v39 }
 0x9c7   : > { %3110 = vrsqrt.f32 %v1421_v40 }
 0x9cd   : > { %v3109_v41 = vpop.eup %3108 }
 0x9ce   : > { %v1424_v42 = vmul.f32 %v3109_v41, %v1408_v21 }
 0x9d0   : > { %v1432_v45 = vmul.f32 %v2782_v43, %v1424_v42 }
 0x9d1   : > { %v3111_v44 = vpop.eup %3110 }
 0x9d2   : > { %v1425_v47 = vmul.f32 %v3111_v44, %v1409_v25  ;;  %v3482_v51 = vadd.f32 %v2783_v48, %v1432_v45 }
 0x9d4   : > { %v1433_v50 = vmul.f32 %v2782_v43, %v1425_v47 }
 0x9d6   : > { %v3484_v52 = vadd.f32 %v2783_v48, %v1433_v50 }
 0x9d8   : > { %v1446_v53 = vpack.c.bf16 %v3484_v52, %v3482_v51 }
 0x9da   : > { %2955 = vmatmul.mubr.msk.bf16.vlgmr.msra.gmra.mrb[12].mxu1 %vm929_vm0, %v1446_v53 }
 0x9db   : > { %2974 = vmatprep.mubr.msk.bf16.mxu1 %vm3171_vm1, %v3170_v18 }
 0xaad   : > { %v1493_v2 = vpop.f32.mrb[12].mxu1 }
 0xaae   : > { %v1494_v3 = vadd.f32 %v2784_v1, %v1493_v2  ;;  %v2956_v4 = vpop.f32.mrb[13].mxu1 }
 0xaaf   : > { %v1496_v5 = vpop.f32.mrb[14].mxu1  ;;  %v2789_v4 = vld [vmem:[%s3827_s18] ss:$0 sm:$0xff] }
 0xab0   : > { %v1502_v6 = vmul.f32 0.044715, %v1494_v3  ;;  %v1497_v7 = vadd.f32 %v2784_v1, %v1496_v5  ;;  %v2957_v8 = vpop.f32.mrb[15].mxu1  ;;  %v1500_v22 = vmul.f32 0.5, %v1494_v3 }
 0xab2   : > { %v1504_v9 = vmul.f32 %v1502_v6, %v1494_v3  ;;  %v1503_v10 = vmul.f32 0.044715, %v1497_v7  ;;  %v1501_v23 = vmul.f32 0.5, %v1497_v7 }
 0xab4   : > { %v1506_v11 = vmul.f32 %v1504_v9, %v1494_v3  ;;  %v1505_v12 = vmul.f32 %v1503_v10, %v1497_v7  ;;  %v2795_v9 = vld [vmem:[%s3875_s1 + $0x1] ss:$0 sm:$0xff]  ;;  %s923_s1 = scalar_lea.vmem %s3837_s28, %s3747_s24 }
 0xab6   : > { %v1508_v13 = vadd.f32 %v1506_v11, %v1494_v3  ;;  %v1507_v14 = vmul.f32 %v1505_v12, %v1497_v7 }
 0xab8   : > { %v1510_v15 = vmul.f32 0.7978846, %v1508_v13  ;;  %v1509_v16 = vadd.f32 %v1507_v14, %v1497_v7 }
 0xaba   : > { %3112 = vtanh.f32 %v1510_v15  ;;  %v1511_v17 = vmul.f32 0.7978846, %v1509_v16 }
 0xabc   : > { %3114 = vtanh.f32 %v1511_v17 }
 0xac4   : > { %v3113_v19 = vpop.eup %3112 }
 0xac5   : > { %v1514_v20 = vadd.f32 1.0, %v3113_v19 }
 0xac6   : > { %v3115_v21 = vpop.eup %3114 }
 0xac7   : > { %v1515_v24 = vadd.f32 1.0, %v3115_v21  ;;  %v1516_v25 = vmul.f32 %v1514_v20, %v1500_v22 }
 0xac9   : > { %v1517_v26 = vmul.f32 %v1515_v24, %v1501_v23 }
 0xacb   : > { %v1526_v27 = vpack.c.bf16 %v1517_v26, %v1516_v25 }
 0xacd   : > { %2967 = vmatmul.mubr.msk.bf16.vlgmr.msra.gmra.mrb[16].mxu0 %vm1538_vm3, %v1526_v27 }
 0xace   : > { %2986 = vmatprep.mubr.msk.bf16.mxu0 %vm3171_vm1, %v3170_v18 }
 0xba0   : > { %v1576_v37 = vpop.f32.mrb[16].mxu0 }
 0xba1   : > { %v1577_v28 = vadd.f32 %v2786_v36, %v1576_v37  ;;  %v2968_v29 = vpop.f32.mrb[17].mxu0 }
 0xba2   : > { %v1579_v30 = vpop.f32.mrb[18].mxu0 }
 0xba3   : > { %v1580_v31 = vadd.f32 %v2786_v36, %v1579_v30  ;;  %v2969_v32 = vpop.f32.mrb[19].mxu0  ;;  %v1583_v33 = vadd.f32 %v1577_v28, %v3482_v51  ;;  %v2790_v51 = vld [vmem:[%s3872_s2 + $0x20] sm:$0xff] }
 0xba5   : > { %v1587_v34 = vsel %vm929_vm0, %v1583_v33, 0.0  ;;  %v1584_v35 = vadd.f32 %v1580_v31, %v3484_v52  ;;  %v2791_v52 = vld [vmem:[%s3872_s2 + $0x28] sm:$0xff] }
 0xba6   : > { %1588 = vadd.xlane.f32.xlu1 %v1587_v34  ;;  %v1635_v53 = vpack.c.bf16 %v2791_v52, %v2790_v51 }
 0xba7   : > { %v1590_v38 = vsel %vm929_vm0, %v1584_v35, 0.0 }
 0xba8   : > { %2971 = vmatpush3.bf16.msra.mxu1 %v1635_v53  ;;  %v2798_v53 = vld [vmem:[%s3877_s12 + $0x20] sm:$0xff] }
 0xba9   : > { %2972 = vmatprep.subr.bf16.mxu1 %v3170_v18  ;;  %v1822_v55 = vpack.c.bf16 %v2799_v54, %v2798_v53 }
 0xbaa   : > { %1591 = vadd.xlane.f32.xlu1 %v1590_v38 }
 0xbac   : > { %2973 = vmatpush3.bf16.msra.mxu1 %v1636_v56 }
 0xbad   : > { %2978 = vmatprep.subr.bf16.mxu1 %v3170_v18 }
 0xc33   : > { %v1589_v39 = vpop.xlane.xlu1 %1588 }
 0xc34   : > { %v1593_v40 = vmul.f32 0.03125, %v1589_v39 }
 0xc36   : > { %v1595_v41 = vsub.f32 %v1583_v33, %v1593_v40 }
 0xc37   : > { %v1592_v42 = vpop.xlane.xlu1 %1591 }
 0xc38   : > { %v1594_v43 = vmul.f32 0.03125, %v1592_v42  ;;  %v1597_v44 = vmul.f32 %v1595_v41, %v1595_v41 }
 0xc3a   : > { %v1596_v45 = vsub.f32 %v1584_v35, %v1594_v43  ;;  %v1599_v47 = vsel %vm929_vm0, %v1597_v44, 0.0 }
 0xc3b   : > { %1600 = vadd.xlane.f32.xlu0 %v1599_v47 }
 0xc3c   : > { %v1598_v48 = vmul.f32 %v1596_v45, %v1596_v45 }
 0xc3e   : > { %v1602_v50 = vsel %vm929_vm0, %v1598_v48, 0.0 }
 0xc3f   : > { %1603 = vadd.xlane.f32.xlu1 %v1602_v50 }
 0xcc8   : > { %v1601_v57 = vpop.xlane.xlu0 %1600 }
 0xcc9   : > { %v1605_v58 = vmul.f32 0.03125, %v1601_v57 }
 0xccb   : > { %v1607_v46 = vadd.f32 1e-12, %v1605_v58 }
 0xccc   : > { %v1604_v59 = vpop.xlane.xlu1 %1603 }
 0xccd   : > { %3116 = vrsqrt.f32 %v1607_v46  ;;  %v1606_v60 = vmul.f32 0.03125, %v1604_v59 }
 0xccf   : > { %v1608_v61 = vadd.f32 1e-12, %v1606_v60 }
 0xcd1   : > { %3118 = vrsqrt.f32 %v1608_v61 }
 0xcd7   : > { %v3117_v62 = vpop.eup %3116 }
 0xcd8   : > { %v1611_v63 = vmul.f32 %v3117_v62, %v1595_v41 }
 0xcda   : > { %v1619_v2 = vmul.f32 %v2788_v0, %v1611_v63 }
 0xcdb   : > { %v3119_v1 = vpop.eup %3118 }
 0xcdc   : > { %v1612_v3 = vmul.f32 %v3119_v1, %v1596_v45  ;;  %v3554_v6 = vadd.f32 %v2789_v4, %v1619_v2 }
 0xcde   : > { %v1620_v5 = vmul.f32 %v2788_v0, %v1612_v3 }
 0xce0   : > { %v3556_v7 = vadd.f32 %v2789_v4, %v1620_v5 }
 0xce2   : > { %v1634_v8 = vpack.c.bf16 %v3556_v7, %v3554_v6 }
 0xce4   : > { %2975 = vmatmul.mubr.msk.bf16.vlgmr.msra.gmra.mrb[16].mxu1 %vm929_vm0, %v1634_v8 }
 0xce5   : > { %2980 = vmatprep.mubr.msk.bf16.mxu1 %vm3171_vm1, %v3170_v18 }
 0xdb7   : > { %v1682_v10 = vpop.f32.mrb[16].mxu1 }
 0xdb8   : > { %v2976_v11 = vpop.f32.mrb[17].mxu1  ;;  %v1683_v13 = vadd.f32 %v2795_v9, %v1682_v10 }
 0xdb9   : > { %v1685_v12 = vpop.f32.mrb[18].mxu1 }
 0xdba   : > { %v1686_v14 = vadd.f32 %v2795_v9, %v1685_v12  ;;  %v2977_v15 = vpop.f32.mrb[19].mxu1 }
 0xdbc   : > { %v3566_v16 = vpack.c.bf16 %v1686_v14, %v1683_v13 }
 0xdbe   : > { %1698 = vrot.lane.b32.xlu1 %v3566_v16, %s3882_s9 }
 0xe30   : > { %v1699_v17 = vpop.permute.xlu1 %1698 }
 0xe31   : > { %v1704_v19 = vsel %vm1041_vm2, %v1699_v17, 0 }
 0xe32   : > { %2979 = vmatpush3.bf16.xpose.msra.mxu1 %v1704_v19 }
 0xe33   : > { %2990 = vmatprep.subr.bf16.mxu1 %v3170_v18 }
 0xe39   : > { %2981 = vmatmul.mubr.msk.bf16.vlgmr.msra.gmra.mrb[20].mxu1 %vm1041_vm2, %v3566_v16 }
 0xe3a   : > { %2992 = vmatprep.mubr.msk.bf16.mxu1 %vm3171_vm1, %v3170_v18  ;;  %2991 = vmatpush3.bf16.msra.mxu1 %v1822_v55 }
 0xe3b   : > { %3002 = vmatprep.subr.bf16.mxu1 %v3170_v18 }
 0xf0c   : > { %v1740_v20 = vpop.f32.mrb[20].mxu1 }
 0xf0d   : > { %v1747_v21 = vmul.f32 0.25, %v1740_v20  ;;  %v2982_v22 = vpop.f32.mrb[21].mxu1  ;;  %v2801_v20 = vld [vmem:[%s3877_s12 + $0x38] sm:$0xff] }
 0xf0e   : > { %v1743_v23 = vpop.f32.mrb[22].mxu1 }
 0xf0f   : > { %v1748_v24 = vmul.f32 0.25, %v1743_v23  ;;  %v2983_v25 = vpop.f32.mrb[23].mxu1  ;;  %v1749_v26 = vadd.f32 %v3402_v49, %v1747_v21 }
 0xf11   : > { %v1751_v27 = vsel %vm1041_vm2, %v1749_v26, -inf  ;;  %v1750_v36 = vadd.f32 %v3402_v49, %v1748_v24 }
 0xf12   : > { %1752 = vmax.xlane.f32.xlu1 %v1751_v27 }
 0xf13   : > { %v1754_v37 = vsel %vm1041_vm2, %v1750_v36, -inf }
 0xf14   : > { %1755 = vmax.xlane.f32.xlu0 %v1754_v37 }
 0xf23   : > { %1877 = vrot.lane.b32.xlu1 %v3566_v16, %s3883_s7 }
 0xf9f   : > { %v1753_v28 = vpop.xlane.xlu1 %1752 }
 0xfa0   : > { %v1757_v29 = vsub.f32 %v1749_v26, %v1753_v28 }
 0xfa1   : > { %v1756_v30 = vpop.xlane.xlu0 %1755 }
 0xfa2   : > { %v1759_v31 = vmul.f32 1.442695, %v1757_v29  ;;  %v1758_v32 = vsub.f32 %v1750_v36, %v1756_v30 }
 0xfa3   : > { %v1878_v48 = vpop.permute.xlu1 %1877 }
 0xfa4   : > { %3120 = vpow2.f32 %v1759_v31  ;;  %v1761_v33 = vmul.f32 1.442695, %v1758_v32  ;;  %v1883_v51 = vsel %vm1041_vm2, %v1878_v48, 0 }
 0xfa6   : > { %3122 = vpow2.f32 %v1761_v33 }
 0xfae   : > { %v3121_v34 = vpop.eup %3120 }
 0xfaf   : > { %v1763_v35 = vsel %vm1041_vm2, %v3121_v34, 0.0 }
 0xfb0   : > { %v3123_v38 = vpop.eup %3122  ;;  %1764 = vadd.xlane.f32.xlu0 %v1763_v35 }
 0xfb1   : > { %v1766_v39 = vsel %vm1041_vm2, %v3123_v38, 0.0 }
 0xfb4   : > { %1767 = vadd.xlane.f32.xlu0 %v1766_v39 }
 0xfca   : > { %1774 = vrot.lane.b32.xlu0 %v3566_v16, %s3884_s6  ;;  %s3888_s6 = sld [smem:[#allocation6_spill]] }
 0xfce   : > { %1875 = vrot.lane.b32.xlu0 %v3566_v16, %s3885_s0 }
 0xfd0   : > { %s906_s0 = scalar_lea.vmem %s3888_s6, %s3747_s24 }
0x103d   : > { %v1765_v40 = vpop.xlane.xlu0 %1764 }
0x103e   : > { %3124 = vrcp.f32 %v1765_v40 }
0x1041   : > { %v1768_v41 = vpop.xlane.xlu0 %1767 }
0x1042   : > { %3126 = vrcp.f32 %v1768_v41 }
0x1045   : > { %v1775_v42 = vpop.permute.xlu0 %1774 }
0x1046   : > { %2985 = vmatpush3.bf16.msra.mxu0 %v1775_v42 }
0x1047   : > { %2996 = vmatprep.subr.bf16.mxu0 %v3170_v18 }
0x1048   : > { %v3125_v43 = vpop.eup %3124 }
0x1049   : > { %v1771_v45 = vmul.f32 %v3125_v43, %v3121_v34  ;;  %v1876_v52 = vpop.permute.xlu0 %1875 }
0x104c   : > { %v3127_v44 = vpop.eup %3126 }
0x104d   : > { %v1772_v47 = vmul.f32 %v3127_v44, %v3123_v38  ;;  %v2805_v38 = vld [vmem:[%s3878_s29 + $0x1] ss:$0 sm:$0xff] }
0x104f   : > { %v1773_v50 = vpack.c.bf16 %v1772_v47, %v1771_v45 }
0x1051   : > { %2987 = vmatmul.mubr.msk.bf16.vlgmr.msra.gmra.mrb[20].mxu0 %vm1041_vm2, %v1773_v50 }
0x1052   : > { %2997 = vmatpush3.bf16.xpose.msra.mxu0 %v1883_v51  ;;  %2998 = vmatprep.mubr.msk.bf16.mxu0 %vm3171_vm1, %v3170_v18 }
0x1053   : > { %3008 = vmatprep.subr.bf16.mxu0 %v3170_v18 }
0x1059   : > { %2999 = vmatmul.mubr.msk.bf16.vlgmr.msra.gmra.mrb[24].mxu0 %vm1041_vm2, %v1876_v52 }
0x105a   : > { %3010 = vmatprep.mubr.msk.bf16.mxu0 %vm3171_vm1, %v3170_v18 }
0x1124   : > { %v1814_v56 = vpop.f32.mrb[20].mxu0 }
0x1125   : > { %v2988_v57 = vpop.f32.mrb[21].mxu0 }
0x1126   : > { %v1817_v58 = vpop.f32.mrb[22].mxu0 }
0x1127   : > { %v1821_v46 = vpack.c.bf16 %v1817_v58, %v1814_v56  ;;  %v2989_v59 = vpop.f32.mrb[23].mxu0 }
0x1129   : > { %2993 = vmatmul.mubr.msk.bf16.vlgmr.msra.gmra.mrb[24].mxu1 %vm1041_vm2, %v1821_v46 }
0x112a   : > { %3004 = vmatprep.mubr.msk.bf16.mxu1 %vm3171_vm1, %v3170_v18 }
0x112c   : > { %v1919_v60 = vpop.f32.mrb[24].mxu0 }
0x112d   : > { %v1926_v61 = vmul.f32 0.25, %v1919_v60  ;;  %v3000_v62 = vpop.f32.mrb[25].mxu0 }
0x112e   : > { %v1922_v63 = vpop.f32.mrb[26].mxu0 }
0x112f   : > { %v1927_v0 = vmul.f32 0.25, %v1922_v63  ;;  %v3001_v1 = vpop.f32.mrb[27].mxu0  ;;  %v1928_v2 = vadd.f32 %v3402_v49, %v1926_v61  ;;  %v2814_v61 = vld [vmem:[%s3879_s13 + $0x28] sm:$0xff]  ;;  %v2815_v63 = vld [vmem:[%s3879_s13 + $0x30] sm:$0xff] }
0x1131   : > { %v1930_v3 = vsel %vm1041_vm2, %v1928_v2, -inf  ;;  %v1929_v4 = vadd.f32 %v3402_v49, %v1927_v0  ;;  %v2800_v49 = vld [vmem:[%s3877_s12 + $0x30] sm:$0xff]  ;;  %v2816_v0 = vld [vmem:[%s3879_s13 + $0x38] sm:$0xff] }
0x1132   : > { %1931 = vmax.xlane.f32.xlu0 %v1930_v3  ;;  %v2001_v21 = vpack.c.bf16 %v2801_v20, %v2800_v49  ;;  %v2103_v1 = vpack.c.bf16 %v2816_v0, %v2815_v63 }
0x1133   : > { %v1933_v5 = vsel %vm1041_vm2, %v1929_v4, -inf }
0x1134   : > { %1934 = vmax.xlane.f32.xlu1 %v1933_v5  ;;  %3009 = vmatpush3.bf16.msra.mxu0 %v2001_v21 }
0x1135   : > { %3022 = vmatprep.subr.bf16.mxu0 %v3170_v18 }
0x11bf   : > { %v1932_v8 = vpop.xlane.xlu0 %1931 }
0x11c0   : > { %v1936_v9 = vsub.f32 %v1928_v2, %v1932_v8 }
0x11c1   : > { %v1935_v10 = vpop.xlane.xlu1 %1934 }
0x11c2   : > { %v1938_v11 = vmul.f32 1.442695, %v1936_v9  ;;  %v1937_v12 = vsub.f32 %v1929_v4, %v1935_v10 }
0x11c4   : > { %3128 = vpow2.f32 %v1938_v11  ;;  %v1940_v13 = vmul.f32 1.442695, %v1937_v12  ;;  %v2811_v12 = vld [vmem:[%s3880_s5 + $0x1] ss:$0 sm:$0xff] }
0x11c6   : > { %3130 = vpow2.f32 %v1940_v13 }
0x11ce   : > { %v3129_v14 = vpop.eup %3128 }
0x11cf   : > { %v1942_v15 = vsel %vm1041_vm2, %v3129_v14, 0.0 }
0x11d0   : > { %v3131_v17 = vpop.eup %3130  ;;  %1943 = vadd.xlane.f32.xlu0 %v1942_v15 }
0x11d1   : > { %v1945_v19 = vsel %vm1041_vm2, %v3131_v17, 0.0 }
0x11d4   : > { %1946 = vadd.xlane.f32.xlu0 %v1945_v19 }
0x11ea   : > { %1953 = vrot.lane.b32.xlu0 %v3566_v16, %s3886_s8  ;;  %s910_s8 = scalar_lea.vmem %s3887_s4, %s3747_s24 }
0x11fc   : > { %v1860_v22 = vpop.f32.mrb[24].mxu1 }
0x11fd   : > { %v2994_v23 = vpop.f32.mrb[25].mxu1  ;;  %v1873_v39 = vadd.f32 %v2805_v38, %v1860_v22  ;;  %v2820_v22 = vld [vmem:[%s3824_s15 + $0x40] sm:$0xff] }
0x11fe   : > { %v1863_v24 = vpop.f32.mrb[26].mxu1  ;;  %v2821_v23 = vld [vmem:[%s3824_s15 + $0x48] sm:$0xff] }
0x11ff   : > { %v2995_v25 = vpop.f32.mrb[27].mxu1  ;;  %v1874_v41 = vadd.f32 %v2805_v38, %v1863_v24  ;;  %v2822_v24 = vld [vmem:[%s3824_s15 + $0x50] sm:$0xff] }
0x1200   : > { %v2184_v25 = vpack.c.bf16 %v2821_v23, %v2820_v22  ;;  %v2291_v22 = vld [vmem:[%s3828_s19 + $0x18] sm:$0xff] }
0x125d   : > { %v1944_v26 = vpop.xlane.xlu0 %1943 }
0x125e   : > { %3132 = vrcp.f32 %v1944_v26  ;;  %v2823_v26 = vld [vmem:[%s3824_s15 + $0x58] sm:$0xff] }
0x1261   : > { %v1947_v27 = vpop.xlane.xlu0 %1946 }
0x1262   : > { %3134 = vrcp.f32 %v1947_v27  ;;  %v2185_v27 = vpack.c.bf16 %v2823_v26, %v2822_v24 }
0x1265   : > { %v1954_v16 = vpop.permute.xlu0 %1953 }
0x1266   : > { %3003 = vmatpush3.bf16.msra.mxu1 %v1954_v16  ;;  %v2824_v16 = vld [vmem:[%s3824_s15 + $0x60] sm:$0xff] }
0x1267   : > { %3014 = vmatprep.subr.bf16.mxu1 %v3170_v18 }
0x1268   : > { %v3133_v36 = vpop.eup %3132 }
0x1269   : > { %v1950_v28 = vmul.f32 %v3133_v36, %v3129_v14  ;;  %v2825_v36 = vld [vmem:[%s3824_s15 + $0x68] sm:$0xff] }
0x126c   : > { %v3135_v37 = vpop.eup %3134 }
0x126d   : > { %v1951_v29 = vmul.f32 %v3135_v37, %v3131_v17  ;;  %v2812_v17 = vld [vmem:[%s3881_s3 + $0x1] ss:$0 sm:$0xff]  ;;  %v2186_v37 = vpack.c.bf16 %v2825_v36, %v2824_v16  ;;  %s3889_s3 = sshll.u32 %s3893_s30, 4  ;;  %s914_s30 = scalar_lea.vmem %s3890_s11, %s3747_s24 }
0x126f   : > { %v1952_v30 = vpack.c.bf16 %v1951_v29, %v1950_v28  ;;  %v2826_v28 = vld [vmem:[%s3824_s15 + $0x70] sm:$0xff]  ;;  %v2827_v29 = vld [vmem:[%s3824_s15 + $0x78] sm:$0xff] }
0x1271   : > { %3005 = vmatmul.mubr.msk.bf16.vlgmr.msra.gmra.mrb[28].mxu1 %vm1041_vm2, %v1952_v30  ;;  %v2187_v30 = vpack.c.bf16 %v2827_v29, %v2826_v28  ;;  %v2833_v29 = vld [vmem:[%s3826_s17 + $0x1] ss:$0 sm:$0xff] }
0x1272   : > { %3018 = vmatprep.mubr.msk.bf16.mxu1 %vm3171_vm1, %v3170_v18 }
0x1344   : > { %v1993_v31 = vpop.f32.mrb[28].mxu1 }
0x1345   : > { %v3006_v32 = vpop.f32.mrb[29].mxu1 }
0x1346   : > { %v1996_v33 = vpop.f32.mrb[30].mxu1 }
0x1347   : > { %v2000_v34 = vpack.c.bf16 %v1996_v33, %v1993_v31  ;;  %v3007_v35 = vpop.f32.mrb[31].mxu1  ;;  %v2818_v31 = vld [vmem:[%s3823_s14 + $0x1] ss:$0 sm:$0xff] }
0x1349   : > { %3011 = vmatmul.mubr.msk.bf16.vlgmr.msra.gmra.mrb[28].mxu0 %vm1041_vm2, %v2000_v34 }
0x134a   : > { %3030 = vmatprep.mubr.msk.bf16.mxu0 %vm3171_vm1, %v3170_v18  ;;  %3023 = vmatpush3.bf16.msra.mxu0 %v2184_v25 }
0x134b   : > { %3024 = vmatprep.subr.bf16.mxu0 %v3170_v18 }
0x134e   : > { %3025 = vmatpush3.bf16.msra.mxu0 %v2185_v27 }
0x134f   : > { %3026 = vmatprep.subr.bf16.mxu0 %v3170_v18 }
0x1352   : > { %3027 = vmatpush3.bf16.msra.mxu0 %v2186_v37 }
0x1353   : > { %3028 = vmatprep.subr.bf16.mxu0 %v3170_v18 }
0x1356   : > { %3029 = vmatpush3.bf16.msra.mxu0 %v2187_v30 }
0x1357   : > { %3050 = vmatprep.subr.bf16.mxu0 %v3170_v18 }
0x141c   : > { %v2039_v40 = vpop.f32.mrb[28].mxu0 }
0x141d   : > { %v2046_v42 = vadd.f32 %v2039_v40, %v1873_v39  ;;  %v3012_v43 = vpop.f32.mrb[29].mxu0 }
0x141e   : > { %v2042_v44 = vpop.f32.mrb[30].mxu0 }
0x141f   : > { %v2047_v45 = vadd.f32 %v2042_v44, %v1874_v41  ;;  %v3013_v47 = vpop.f32.mrb[31].mxu0  ;;  %v2048_v48 = vadd.f32 %v2046_v42, %v3554_v6 }
0x1421   : > { %v2054_v50 = vsel %vm929_vm0, %v2048_v48, 0.0  ;;  %v2049_v51 = vadd.f32 %v2047_v45, %v3556_v7  ;;  %v2813_v7 = vld [vmem:[%s3879_s13 + $0x20] sm:$0xff]  ;;  %s919_s13 = scalar_lea.vmem %s3836_s27, %s3889_s3 }
0x1422   : > { %2055 = vadd.xlane.f32.xlu1 %v2054_v50  ;;  %v2102_v62 = vpack.c.bf16 %v2814_v61, %v2813_v7 }
0x1423   : > { %v2057_v52 = vsel %vm929_vm0, %v2049_v51, 0.0 }
0x1424   : > { %3015 = vmatpush3.bf16.msra.mxu1 %v2102_v62 }
0x1425   : > { %3016 = vmatprep.subr.bf16.mxu1 %v3170_v18 }
0x1426   : > { %2058 = vadd.xlane.f32.xlu1 %v2057_v52 }
0x1428   : > { %3017 = vmatpush3.bf16.msra.mxu1 %v2103_v1 }
0x1429   : > { %3034 = vmatprep.subr.bf16.mxu1 %v3170_v18 }
0x14af   : > { %v2056_v53 = vpop.xlane.xlu1 %2055 }
0x14b0   : > { %v2060_v54 = vmul.f32 0.03125, %v2056_v53 }
0x14b2   : > { %v2062_v55 = vsub.f32 %v2048_v48, %v2060_v54 }
0x14b3   : > { %v2059_v56 = vpop.xlane.xlu1 %2058 }
0x14b4   : > { %v2061_v57 = vmul.f32 0.03125, %v2059_v56  ;;  %v2064_v58 = vmul.f32 %v2062_v55, %v2062_v55 }
0x14b6   : > { %v2063_v46 = vsub.f32 %v2049_v51, %v2061_v57  ;;  %v2066_v59 = vsel %vm929_vm0, %v2064_v58, 0.0 }
0x14b7   : > { %2067 = vadd.xlane.f32.xlu1 %v2066_v59 }
0x14b8   : > { %v2065_v60 = vmul.f32 %v2063_v46, %v2063_v46 }
0x14ba   : > { %v2069_v6 = vsel %vm929_vm0, %v2065_v60, 0.0  ;;  %v2829_v60 = vld [vmem:[%s3825_s16 + $0x1] ss:$0 sm:$0xff] }
0x14bb   : > { %2070 = vadd.xlane.f32.xlu1 %v2069_v6 }
0x1544   : > { %v2068_v2 = vpop.xlane.xlu1 %2067 }
0x1545   : > { %v2072_v3 = vmul.f32 0.03125, %v2068_v2 }
0x1547   : > { %v2074_v4 = vadd.f32 1e-12, %v2072_v3 }
0x1548   : > { %v2071_v5 = vpop.xlane.xlu1 %2070 }
0x1549   : > { %3136 = vrsqrt.f32 %v2074_v4  ;;  %v2073_v8 = vmul.f32 0.03125, %v2071_v5 }
0x154b   : > { %v2075_v9 = vadd.f32 1e-12, %v2073_v8 }
0x154d   : > { %3138 = vrsqrt.f32 %v2075_v9 }
0x1553   : > { %v3137_v10 = vpop.eup %3136 }
0x1554   : > { %v2078_v11 = vmul.f32 %v3137_v10, %v2062_v55 }
0x1556   : > { %v2086_v14 = vmul.f32 %v2811_v12, %v2078_v11 }
0x1557   : > { %v3139_v13 = vpop.eup %3138 }
0x1558   : > { %v2079_v15 = vmul.f32 %v3139_v13, %v2063_v46  ;;  %v2094_v49 = vadd.f32 %v2812_v17, %v2086_v14 }
0x155a   : > { %v2087_v19 = vmul.f32 %v2811_v12, %v2079_v15 }
0x155c   : > { %v3658_v20 = vadd.f32 %v2812_v17, %v2087_v19  ;;  %v2288_v19 = vld [vmem:[%s3828_s19] sm:$0xff] }
0x155e   : > { %v2101_v21 = vpack.c.bf16 %v3658_v20, %v2094_v49 }
0x1560   : > { %3019 = vmatmul.mubr.msk.bf16.vlgmr.msra.gmra.mrb[32].mxu1 %vm929_vm0, %v2101_v21  ;;  %v2290_v21 = vld [vmem:[%s3828_s19 + $0x10] sm:$0xff] }
0x1561   : > { %3038 = vmatprep.mubr.msk.bf16.mxu1 %vm3171_vm1, %v3170_v18  ;;  %v2294_v23 = vpack.c.bf16 %v2291_v22, %v2290_v21 }
0x1633   : > { %v2149_v32 = vpop.f32.mrb[32].mxu1 }
0x1634   : > { %v2150_v33 = vadd.f32 %v2818_v31, %v2149_v32  ;;  %v3020_v34 = vpop.f32.mrb[33].mxu1 }
0x1635   : > { %v2152_v35 = vpop.f32.mrb[34].mxu1 }
0x1636   : > { %v2158_v38 = vmul.f32 0.044715, %v2150_v33  ;;  %v2153_v39 = vadd.f32 %v2818_v31, %v2152_v35  ;;  %v3021_v40 = vpop.f32.mrb[35].mxu1  ;;  %v2156_v55 = vmul.f32 0.5, %v2150_v33  ;;  %v2349_v35 = vld [vmem:[%s3830_s21] sm:$0xff] }
0x1638   : > { %v2160_v41 = vmul.f32 %v2158_v38, %v2150_v33  ;;  %v2159_v42 = vmul.f32 0.044715, %v2153_v39  ;;  %v2157_v56 = vmul.f32 0.5, %v2153_v39  ;;  %v2350_v38 = vld [vmem:[%s3830_s21 + $0x8] sm:$0xff] }
0x163a   : > { %v2162_v43 = vmul.f32 %v2160_v41, %v2150_v33  ;;  %v2161_v44 = vmul.f32 %v2159_v42, %v2153_v39  ;;  %v2353_v41 = vpack.c.bf16 %v2350_v38, %v2349_v35 }
0x163c   : > { %v2164_v45 = vadd.f32 %v2162_v43, %v2150_v33  ;;  %v2163_v47 = vmul.f32 %v2161_v44, %v2153_v39  ;;  %v2834_v33 = vld [vmem:[%s3827_s18 + $0x1] ss:$0 sm:$0xff]  ;;  %v2351_v43 = vld [vmem:[%s3830_s21 + $0x10] sm:$0xff]  ;;  %v2352_v44 = vld [vmem:[%s3830_s21 + $0x18] sm:$0xff] }
0x163e   : > { %v2166_v48 = vmul.f32 0.7978846, %v2164_v45  ;;  %v2165_v50 = vadd.f32 %v2163_v47, %v2153_v39  ;;  %v2354_v45 = vpack.c.bf16 %v2352_v44, %v2351_v43  ;;  %v2408_v47 = vld [vmem:[#allocation2] sm:$0x1] }
0x1640   : > { %3140 = vtanh.f32 %v2166_v48  ;;  %v2167_v51 = vmul.f32 0.7978846, %v2165_v50  ;;  %v3177_v48 = vmov 0   ;;  %v2465_v50 = vld [vmem:[%s910_s8] sm:$0x3] }
0x1641   : > { %3086 = vset.pattern.permute.xlu1 %v3177_v48  ;;  %3087 = vset.pattern.permute.xlu0 %v3177_v48 }
0x1642   : > { %3142 = vtanh.f32 %v2167_v51  ;;  %v2464_v51 = vld [vmem:[%s906_s0] sm:$0x3] }
0x164a   : > { %v3141_v52 = vpop.eup %3140 }
0x164b   : > { %v2170_v53 = vadd.f32 1.0, %v3141_v52  ;;  %v2835_v52 = vld [vmem:[%s3829_s20] ss:$0 sm:$0xff] }
0x164c   : > { %v3143_v54 = vpop.eup %3142 }
0x164d   : > { %v2171_v57 = vadd.f32 1.0, %v3143_v54  ;;  %v2172_v58 = vmul.f32 %v2170_v53, %v2156_v55 }
0x164f   : > { %v2173_v46 = vmul.f32 %v2171_v57, %v2157_v56 }
0x1651   : > { %v2183_v59 = vpack.c.bf16 %v2173_v46, %v2172_v58  ;;  %v2837_v46 = vld [vmem:[%s3831_s22] ss:$0 sm:$0xff] }
0x1653   : > { %3031 = vmatmul.mubr.msk.bf16.vlgmr.msra.gmra.mrb[32].mxu0 %vm1538_vm3, %v2183_v59 }
0x1654   : > { %3052 = vmatprep.mubr.msk.bf16.mxu0 %vm3171_vm1, %v3170_v18 }
0x1726   : > { %v2233_v6 = vpop.f32.mrb[32].mxu0 }
0x1727   : > { %v2234_v7 = vadd.f32 %v2829_v60, %v2233_v6  ;;  %v3032_v61 = vpop.f32.mrb[33].mxu0 }
0x1728   : > { %v2236_v62 = vpop.f32.mrb[34].mxu0 }
0x1729   : > { %v2237_v63 = vadd.f32 %v2829_v60, %v2236_v62  ;;  %v3033_v0 = vpop.f32.mrb[35].mxu0  ;;  %v2240_v1 = vadd.f32 %v2234_v7, %v2094_v49  ;;  %v2289_v49 = vld [vmem:[%s3828_s19 + $0x8] sm:$0xff] }
0x172b   : > { %v2246_v2 = vsel %vm929_vm0, %v2240_v1, 0.0  ;;  %v2241_v3 = vadd.f32 %v2237_v63, %v3658_v20  ;;  %v2293_v20 = vpack.c.bf16 %v2289_v49, %v2288_v19 }
0x172c   : > { %2247 = vadd.xlane.f32.xlu1 %v2246_v2 }
0x172d   : > { %v2249_v4 = vsel %vm929_vm0, %v2241_v3, 0.0  ;;  %3035 = vmatpush3.bf16.msra.mxu1 %v2293_v20 }
0x172e   : > { %2250 = vadd.xlane.f32.xlu0 %v2249_v4  ;;  %3036 = vmatprep.subr.bf16.mxu1 %v3170_v18 }
0x1731   : > { %3037 = vmatpush3.bf16.msra.mxu1 %v2294_v23 }
0x1732   : > { %3042 = vmatprep.subr.bf16.mxu1 %v3170_v18 }
0x1744   : > { %2473 = vperm.xlu0 %3087, %v2465_v50  }
0x17b9   : > { %v2248_v5 = vpop.xlane.xlu1 %2247 }
0x17ba   : > { %v2252_v8 = vmul.f32 0.03125, %v2248_v5  ;;  %v2414_v5 = vlaneseq }
0x17bb   : > { %v2251_v9 = vpop.xlane.xlu0 %2250 }
0x17bc   : > { %v2254_v10 = vsub.f32 %v2240_v1, %v2252_v8  ;;  %v2253_v11 = vmul.f32 0.03125, %v2251_v9  ;;  %v2415_v8 = vshrl.u32 %v2414_v5, 7 }
0x17be   : > { %v2255_v12 = vsub.f32 %v2241_v3, %v2253_v11  ;;  %v2256_v13 = vmul.f32 %v2254_v10, %v2254_v10  ;;  %v2405_v3 = vld [vmem:[%s3832_s23] sm:$0x1] }
0x17bf   : > { %v2406_v4 = vpack.c.bf16 %v2405_v3, %v2405_v3 }
0x17c0   : > { %v2258_v14 = vsel %vm929_vm0, %v2256_v13, 0.0  ;;  %v2257_v15 = vmul.f32 %v2255_v12, %v2255_v12 }
0x17c1   : > { %2259 = vadd.xlane.f32.xlu1 %v2258_v14 }
0x17c2   : > { %v2261_v17 = vsel %vm929_vm0, %v2257_v15, 0.0 }
0x17c3   : > { %v2474_v14 = vpop.permute.xlu0 %2473 }
0x17c5   : > { %2262 = vadd.xlane.f32.xlu1 %v2261_v17 }
0x17d6   : > { %2411 = vperm.xlu1 %3086, %v2408_v47  }
0x17da   : > { %2469 = vperm.xlu1 %3086, %v2464_v51  }
0x184e   : > { %v2260_v24 = vpop.xlane.xlu1 %2259 }
0x184f   : > { %v2264_v25 = vmul.f32 0.03125, %v2260_v24 }
0x1851   : > { %v2266_v26 = vadd.f32 1e-12, %v2264_v25 }
0x1852   : > { %v2263_v27 = vpop.xlane.xlu1 %2262 }
0x1853   : > { %3144 = vrsqrt.f32 %v2266_v26  ;;  %v2265_v16 = vmul.f32 0.03125, %v2263_v27 }
0x1855   : > { %v2267_v36 = vadd.f32 1e-12, %v2265_v16 }
0x1856   : > { %v2412_v9 = vpop.permute.xlu1 %2411 }
0x1857   : > { %3146 = vrsqrt.f32 %v2267_v36  ;;  %v2538_v36 = vld [vmem:[%s3834_s25] sm:$0xff] }
0x185a   : > { %v2470_v13 = vpop.permute.xlu1 %2469 }
0x185d   : > { %v3145_v37 = vpop.eup %3144 }
0x185e   : > { %v2270_v28 = vmul.f32 %v3145_v37, %v2254_v10  ;;  %v2416_v10 = vsub.s32 0, %v2415_v8  ;;  %v2539_v37 = vld [vmem:[%s3834_s25 + $0x8] sm:$0xff] }
0x1860   : > { %v2278_v31 = vmul.f32 %v2833_v29, %v2270_v28  ;;  %v2417_v11 = vrot.slane %v2412_v9, %v2416_v10  ;;  %v2543_v28 = vpack.c.bf16 %v2539_v37, %v2538_v36 }
0x1861   : > { %v3147_v30 = vpop.eup %3146 }
0x1862   : > { %v2271_v32 = vmul.f32 %v3147_v30, %v2255_v12  ;;  %v2286_v39 = vadd.f32 %v2834_v33, %v2278_v31  ;;  %v2467_v12 = vand.u32 127, %v2414_v5 }
0x1864   : > { %v2279_v34 = vmul.f32 %v2833_v29, %v2271_v32  ;;  %vm2471_vm5 = vcmp.ge.s32.totalorder %v2467_v12, %v2470_v13  ;;  %vm2475_vm6 = vcmp.lt.s32.totalorder %v2467_v12, %v2474_v14 }
0x1865   : > { %vm2476_vm8 = vmand %vm2471_vm5, %vm2475_vm6 }
0x1866   : > { %v2287_v40 = vadd.f32 %v2834_v33, %v2279_v34  ;;  %v2540_v33 = vld [vmem:[%s3834_s25 + $0x10] sm:$0xff]  ;;  %v2541_v34 = vld [vmem:[%s3834_s25 + $0x18] sm:$0xff] }
0x1867   : > { %v2544_v35 = vpack.c.bf16 %v2541_v34, %v2540_v33 }
0x1868   : > { %v2292_v42 = vpack.c.bf16 %v2287_v40, %v2286_v39 }
0x186a   : > { %3039 = vmatmul.mubr.msk.bf16.vlgmr.msra.gmra.mrb[36].mxu1 %vm929_vm0, %v2292_v42 }
0x186b   : > { %3043 = vmatpush3.bf16.msra.mxu1 %v2353_v41  ;;  %3046 = vmatprep.mubr.msk.bf16.mxu1 %vm3171_vm1, %v3170_v18 }
0x186c   : > { %3044 = vmatprep.subr.bf16.mxu1 %v3170_v18 }
0x186f   : > { %3045 = vmatpush3.bf16.msra.mxu1 %v2354_v45 }
0x1870   : > { %3056 = vmatprep.subr.bf16.mxu1 %v3170_v18 }
0x1872   : > { %3047 = vmatmul.mubr.msk.bf16.vlgmr.msra.gmra.mrb[40].mxu1 %vm929_vm0, %v2292_v42 }
0x1873   : > { %3057 = vmatpush3.bf16.msra.mxu1 %v2292_v42  ;;  %3058 = vmatprep.mubr.msk.bf16.mxu1 %vm3171_vm1, %v3170_v18  ;;  %v2841_v42 = vld [vmem:[%s3835_s26] ss:$0 sm:$0xff] }
0x193d   : > { %v2339_v53 = vpop.f32.mrb[36].mxu1 }
0x193e   : > { %v2340_v54 = vadd.f32 %v2835_v52, %v2339_v53  ;;  %v3040_v55 = vpop.f32.mrb[37].mxu1 }
0x193f   : > { %v2342_v56 = vpop.f32.mrb[38].mxu1 }
0x1940   : > { %2347 = vst.msk [vmem:[%s919_s13] sm:$0xff] %vm2346_vm4, %v2340_v54  ;;  %v2343_v57 = vadd.f32 %v2835_v52, %v2342_v56  ;;  %v3041_v58 = vpop.f32.mrb[39].mxu1 }
0x1942   : > { %2348 = vst.msk [vmem:[%s919_s13 + $0x8] sm:$0xff] %vm2346_vm4, %v2343_v57 }
0x1945   : > { %v2396_v59 = vpop.f32.mrb[40].mxu1 }
0x1946   : > { %v2397_v60 = vadd.f32 %v2837_v46, %v2396_v59  ;;  %v3048_v6 = vpop.f32.mrb[41].mxu1  ;;  %v2611_v59 = vld [vmem:[%s914_s30] sm:$0x3] }
0x1947   : > { %v2399_v7 = vpop.f32.mrb[42].mxu1 }
0x1948   : > { %v2400_v61 = vadd.f32 %v2837_v46, %v2399_v7  ;;  %v3049_v62 = vpop.f32.mrb[43].mxu1  ;;  %3148 = vtanh.f32 %v2397_v60 }
0x194a   : > { %3150 = vtanh.f32 %v2400_v61 }
0x1952   : > { %v3149_v63 = vpop.eup %3148 }
0x1954   : > { %v3151_v0 = vpop.eup %3150 }
0x1955   : > { %v2407_v1 = vpack.c.bf16 %v3151_v0, %v3149_v63 }
0x1957   : > { %v2422_v2 = vsel %vm1538_vm3, %v2407_v1, 0 }
0x1958   : > { %3051 = vmatpush3.bf16.xpose.msra.mxu0 %v2422_v2 }
0x1959   : > { %3062 = vmatprep.subr.bf16.mxu0 %v3170_v18 }
0x195f   : > { %3053 = vmatmul.mubr.msk.bf16.vlgmr.msra.gmra.mrb[36].mxu0 %vm1538_vm3, %v2406_v4 }
0x1960   : > { %3066 = vmatprep.mubr.msk.bf16.mxu0 %vm3171_vm1, %v3170_v18  ;;  %3063 = vmatpush3.bf16.msra.mxu0 %v2543_v28 }
0x1961   : > { %3064 = vmatprep.subr.bf16.mxu0 %v3170_v18 }
0x1964   : > { %3065 = vmatpush3.bf16.msra.mxu0 %v2544_v35 }
0x1a32   : > { %v2458_v15 = vpop.f32.mrb[36].mxu0 }
0x1a33   : > { %v2459_v17 = vadd.f32 %v2458_v15, %v2417_v11  ;;  %v3054_v19 = vpop.f32.mrb[37].mxu0 }
0x1a34   : > { %v2461_v49 = vpop.f32.mrb[38].mxu0 }
0x1a35   : > { %v2480_v20 = vrot.slane %v2459_v17, %v2416_v10  ;;  %v3055_v21 = vpop.f32.mrb[39].mxu0 }
0x1a37   : > { %v2481_v22 = vsel %vm2476_vm8, %v2480_v20, -1e+30 }
0x1a38   : > { %v2483_v23 = vsel %vm2482_vm7, %v2481_v22, -inf }
0x1a39   : > { %2484 = vmax.xlane.f32.xlu1 %v2483_v23 }
0x1ac6   : > { %v2485_v24 = vpop.xlane.xlu1 %2484 }
0x1ac7   : > { %v2486_v25 = vsub.f32 %v2481_v22, %v2485_v24 }
0x1ac9   : > { %v2487_v26 = vmul.f32 1.442695, %v2486_v25 }
0x1acb   : > { %3152 = vpow2.f32 %v2487_v26 }
0x1ad5   : > { %v3153_v27 = vpop.eup %3152 }
0x1ad6   : > { %v2489_v16 = vsel %vm2482_vm7, %v3153_v27, 0.0 }
0x1ad7   : > { %2490 = vadd.xlane.f32.xlu1 %v2489_v16 }
0x1b64   : > { %v2491_v29 = vpop.xlane.xlu1 %2490 }
0x1b65   : > { %3154 = vrcp.f32 %v2491_v29 }
0x1b6f   : > { %v3155_v30 = vpop.eup %3154 }
0x1b70   : > { %v2493_v31 = vmul.f32 %v3155_v30, %v3153_v27 }
0x1b72   : > { %v2494_v32 = vpack.c.bf16 %v2493_v31, %v2493_v31 }
0x1b74   : > { %3059 = vmatmul.mubr.msk.bf16.vlgmr.msra.gmra.mrb[44].mxu1 %vm1041_vm2, %v2494_v32 }
0x1c47   : > { %v2532_v38 = vpop.f32.mrb[44].mxu1 }
0x1c48   : > { %v2542_v39 = vpack.c.bf16 %v2532_v38, %v2532_v38  ;;  %v3060_v18 = vpop.f32.mrb[45].mxu1 }
0x1c49   : > { %v2535_v40 = vpop.f32.mrb[46].mxu1 }
0x1c4a   : > { %v3061_v41 = vpop.f32.mrb[47].mxu1  ;;  %3067 = vmatmul.mubr.msk.bf16.vlgmr.msra.gmra.mrb[40].mxu0 %vm929_vm0, %v2542_v39 }
0x1d1d   : > { %v2589_v43 = vpop.f32.mrb[40].mxu0 }
0x1d1e   : > { %v2590_v44 = vadd.f32 %v2841_v42, %v2589_v43  ;;  %v3068_v45 = vpop.f32.mrb[41].mxu0 }
0x1d1f   : > { %v2592_v47 = vpop.f32.mrb[42].mxu0 }
0x1d20   : > { %v3069_v48 = vpop.f32.mrb[43].mxu0  ;;  %v2596_v50 = vsel %vm2595_vm9, %v2590_v44, -inf }
0x1d21   : > { %2597 = vmax.xlane.f32.xlu1 %v2596_v50 }
0x1dae   : > { %v2598_v51 = vpop.xlane.xlu1 %2597 }
0x1daf   : > { %v2599_v52 = vsub.f32 %v2590_v44, %v2598_v51 }
0x1db1   : > { %v2600_v53 = vmul.f32 1.442695, %v2599_v52 }
0x1db3   : > { %3156 = vpow2.f32 %v2600_v53 }
0x1dbd   : > { %v3157_v54 = vpop.eup %3156 }
0x1dbe   : > { %v2602_v55 = vsel %vm2595_vm9, %v3157_v54, 0.0 }
0x1dbf   : > { %2603 = vadd.xlane.f32.xlu0 %v2602_v55 }
0x1e4c   : > { %v2604_v56 = vpop.xlane.xlu0 %2603 }
0x1e4d   : > { %3158 = vlog2.f32 %v2604_v56 }
0x1e57   : > { %v3159_v57 = vpop.eup %3158 }
0x1e58   : > { %v2606_v58 = vmul.f32 0.6931472, %v3159_v57 }
0x1e5a   : > { %v2607_v46 = vadd.f32 %v2606_v58, %v2598_v51 }
0x1e5c   : > { %v2608_v60 = vsub.f32 %v2590_v44, %v2607_v46 }
0x1e5e   : > { %v2612_v6 = vmul.f32 %v2611_v59, %v2608_v60  ;;  %v2609_v7 = vmul.f32 1.442695, %v2608_v60 }
0x1e60   : > { %v2613_v61 = vsel %vm2595_vm9, %v2612_v6, 0.0  ;;  %3160 = vpow2.f32 %v2609_v7 }
0x1e61   : > { %2614 = vadd.xlane.f32.xlu1 %v2613_v61 }
0x1e6a   : > { %v3161_v62 = vpop.eup %3160 }
0x1e6b   : > { %v2617_v63 = vmul.f32 %v3161_v62, %v2611_v59 }
0x1e6d   : > { %v2618_v0 = vsel %vm2595_vm9, %v2617_v63, 0.0 }
0x1e6e   : > { %2619 = vadd.xlane.f32.xlu1 %v2618_v0 }
0x1eee   : > { %v2615_v1 = vpop.xlane.xlu1 %2614 }
0x1eef   : > { %v2616_v3 = vsub.f32 0.0, %v2615_v1 }
0x1efb   : > { %v2620_v2 = vpop.xlane.xlu1 %2619 }
0x1efc   : > { %v2621_v4 = vsub.f32 1.0, %v2620_v2 }
0x1efe   : > { %v2622_v5 = vmul.f32 %v2621_v4, %v2616_v3 }
0x1f00   : > { %v2623_v8 = vmul.f32 %v2622_v5, %v2621_v4 }
0x1f02   : > { %2625 = vst.msk [vmem:[%s923_s1] sm:$0x3] %vm2624_vm10, %v2623_v8 }
0x1f03 PF: > { %s3891_s12 = sld [smem:[#allocation3_spill]] }
0x1f09   : > { %s41_s9 = sadd.s32 1, %s3891_s12  }
0x1f0a   : > { %p38_p4 = scmp.ge.s32.totalorder %s41_s9, 4  }
0x1f0c   :  { %40 = sbr.rel (!%p38_p4) target bundleno = 15 (0xf), region = 194 }

</bundles_post_ra>
